<compile_context>
chip_gen: v7x
topology: tpu7x:2x2x1
jax: 0.10.0
libtpu: 0.0.40
codegen_flags: <defaults>
</compile_context>

<pallas_src>
import functools

import jax
import jax.numpy as jnp
import numpy as np
from jax.experimental import pallas as pl
from jax.experimental.pallas import tpu as pltpu

_LANES = 128


def _round_up(x, m):
    return (x + m - 1) // m * m


@functools.lru_cache(maxsize=1)
def _vmem_limit_bytes():
    # 75% of physical VMEM, capped: leaves headroom for compiler scratch on
    # v7x (64 MiB physical) while letting v5e/v6e (128 MiB) use larger tiles.
    cap = 128 * 1024 * 1024
    try:
        info = pltpu.get_tpu_info()
        cap = int(getattr(info, "vmem_capacity_bytes", cap))
    except Exception:
        cap = 64 * 1024 * 1024  # conservative fallback (fits every generation)
    return max(32 * 1024 * 1024, min(int(cap * 0.75), 100 * 1024 * 1024))


def _pick_tm(m):
    # Largest row tile that divides m and still leaves >= 2 grid steps
    # (keeps both v7x TensorCores busy); fall back to any divisor.
    sizes = (1024, 512, 256, 128, 64, 32, 16, 8)
    for tm in sizes:
        if m % tm == 0 and m // tm >= 2:
            return tm
    for tm in sizes:
        if m % tm == 0:
            return tm
    return m


def _pick_tn(n):
    for tn in (512, 256, 128):
        if n % tn == 0:
            return tn
    return n


# ----------------------------- Pallas kernels -----------------------------

def _mm_shift_relu_kernel(x_ref, w_ref, b_ref, o_ref):
    # y = relu(x @ w + shift)   (BN scale already folded into w on the host)
    y = jnp.dot(x_ref[...], w_ref[...], preferred_element_type=jnp.float32)
    o_ref[...] = jnp.maximum(y + b_ref[...], 0.0).astype(o_ref.dtype)


def _mm_shift_ds_add_relu_kernel(x_ref, w_ref, b_ref, r_ref, wd_ref, bd_ref,
                                 o_ref):
    # main = x @ w + b ; res = r @ wd + bd ; out = relu(main + res)
    y = jnp.dot(x_ref[...], w_ref[...], preferred_element_type=jnp.float32)
    y = y + b_ref[...]
    rd = jnp.dot(r_ref[...], wd_ref[...], preferred_element_type=jnp.float32)
    rd = rd + bd_ref[...]
    o_ref[...] = jnp.maximum(y + rd, 0.0).astype(o_ref.dtype)


def _mm_shift_add_relu_kernel(x_ref, w_ref, b_ref, r_ref, o_ref):
    # identity residual: out = relu(x @ w + b + r)
    y = jnp.dot(x_ref[...], w_ref[...], preferred_element_type=jnp.float32)
    y = y + b_ref[...] + r_ref[...].astype(jnp.float32)
    o_ref[...] = jnp.maximum(y, 0.0).astype(o_ref.dtype)


def _conv_unit_stride_kernel(x_ref, w_ref, b_ref, o_ref, *, kh, kw, ho, wo):
    # Unit-stride kh x kw conv over one whole (padded) image:
    #   x_ref : (HB, WB, CK)        bf16   (HB >= ho+kh-1, WB >= wo+kw-1)
    #   w_ref : (kh*kw*CK, COP)     bf16   (im2col-ordered, BN scale folded)
    #   b_ref : (1, COP)            f32    (per-channel BN shift)
    #   o_ref : (ho*wo, COP)        bf16
    # The kh*kw tap windows are static contiguous slices, concatenated along
    # the channel (lane) axis so the whole conv is ONE MXU dot with K=kh*kw*CK.
    xv = x_ref[...]
    ck = xv.shape[-1]
    pieces = [
        xv[dh:dh + ho, dw:dw + wo, :].reshape(ho * wo, ck)
        for dh in range(kh) for dw in range(kw)
    ]
    patch = jnp.concatenate(pieces, axis=-1)              # (ho*wo, kh*kw*ck)
    acc = jnp.dot(patch, w_ref[...], preferred_element_type=jnp.float32)
    o_ref[...] = jnp.maximum(acc + b_ref[...], 0.0).astype(o_ref.dtype)


# --------------------------- pallas_call wrappers --------------------------

def matmul_shift_relu(x, w, shift, out_dtype=jnp.float32):
    m0, k = x.shape
    n = w.shape[1]
    pad = (-m0) % 8
    if pad:
        x = jnp.pad(x, ((0, pad), (0, 0)))
    m = m0 + pad
    tm = _pick_tm(m)
    tn = _pick_tn(n)
    out = pl.pallas_call(
        _mm_shift_relu_kernel,
        out_shape=jax.ShapeDtypeStruct((m, n), out_dtype),
        grid=(m // tm, n // tn),
        in_specs=[
            pl.BlockSpec((tm, k), lambda i, j: (i, 0)),
            pl.BlockSpec((k, tn), lambda i, j: (0, j)),
            pl.BlockSpec((1, tn), lambda i, j: (0, j)),
        ],
        out_specs=pl.BlockSpec((tm, tn), lambda i, j: (i, j)),
        compiler_params=pltpu.CompilerParams(
            dimension_semantics=("parallel", "parallel"),
            vmem_limit_bytes=_vmem_limit_bytes()),
    )(x, w, shift)
    return out[:m0] if pad else out


def matmul_shift_ds_add_relu(x, w, shift, r, wd, shiftd):
    m0, k = x.shape
    n = w.shape[1]
    kr = r.shape[1]
    pad = (-m0) % 8
    if pad:
        x = jnp.pad(x, ((0, pad), (0, 0)))
        r = jnp.pad(r, ((0, pad), (0, 0)))
    m = m0 + pad
    tm = _pick_tm(m)
    tn = _pick_tn(n)
    out = pl.pallas_call(
        _mm_shift_ds_add_relu_kernel,
        out_shape=jax.ShapeDtypeStruct((m, n), jnp.float32),
        grid=(m // tm, n // tn),
        in_specs=[
            pl.BlockSpec((tm, k), lambda i, j: (i, 0)),
            pl.BlockSpec((k, tn), lambda i, j: (0, j)),
            pl.BlockSpec((1, tn), lambda i, j: (0, j)),
            pl.BlockSpec((tm, kr), lambda i, j: (i, 0)),
            pl.BlockSpec((kr, tn), lambda i, j: (0, j)),
            pl.BlockSpec((1, tn), lambda i, j: (0, j)),
        ],
        out_specs=pl.BlockSpec((tm, tn), lambda i, j: (i, j)),
        compiler_params=pltpu.CompilerParams(
            dimension_semantics=("parallel", "parallel"),
            vmem_limit_bytes=_vmem_limit_bytes()),
    )(x, w, shift, r, wd, shiftd)
    return out[:m0] if pad else out


def matmul_shift_add_relu(x, w, shift, r):
    m0, k = x.shape
    n = w.shape[1]
    pad = (-m0) % 8
    if pad:
        x = jnp.pad(x, ((0, pad), (0, 0)))
        r = jnp.pad(r, ((0, pad), (0, 0)))
    m = m0 + pad
    tm = _pick_tm(m)
    tn = _pick_tn(n)
    out = pl.pallas_call(
        _mm_shift_add_relu_kernel,
        out_shape=jax.ShapeDtypeStruct((m, n), jnp.float32),
        grid=(m // tm, n // tn),
        in_specs=[
            pl.BlockSpec((tm, k), lambda i, j: (i, 0)),
            pl.BlockSpec((k, tn), lambda i, j: (0, j)),
            pl.BlockSpec((1, tn), lambda i, j: (0, j)),
            pl.BlockSpec((tm, tn), lambda i, j: (i, j)),
        ],
        out_specs=pl.BlockSpec((tm, tn), lambda i, j: (i, j)),
        compiler_params=pltpu.CompilerParams(
            dimension_semantics=("parallel", "parallel"),
            vmem_limit_bytes=_vmem_limit_bytes()),
    )(x, w, shift, r)
    return out[:m0] if pad else out


def conv2_bn_relu(xk, wk, shift, *, kh, kw, ho, wo):
    # xk : (N, HB, WB, CK) bf16 -- padded (and, for stride 2, space-to-depth'd)
    # wk : (kh*kw*CK, COP) bf16 ; shift : (1, COP) f32
    # Grid = (N,): one whole image per step.  Weight/shift block indices are
    # constant so they are fetched once; the image block index only changes
    # with the batch index so each input row is DMA'd exactly once.
    n, hb, wb, ck = xk.shape
    cop = wk.shape[-1]
    kern = functools.partial(_conv_unit_stride_kernel, kh=kh, kw=kw, ho=ho, wo=wo)
    out = pl.pallas_call(
        kern,
        out_shape=jax.ShapeDtypeStruct((n, ho * wo, cop), jnp.bfloat16),
        grid=(n,),
        in_specs=[
            pl.BlockSpec((None, hb, wb, ck), lambda b: (b, 0, 0, 0)),
            pl.BlockSpec((kh * kw * ck, cop), lambda b: (0, 0)),
            pl.BlockSpec((1, cop), lambda b: (0, 0)),
        ],
        out_specs=pl.BlockSpec((None, ho * wo, cop), lambda b: (b, 0, 0)),
        compiler_params=pltpu.CompilerParams(
            dimension_semantics=("parallel",),
            vmem_limit_bytes=_vmem_limit_bytes()),
    )(xk, wk, shift)
    return out


# ------------------------------- glue (JAX) --------------------------------

def _bn_fold(bn, eps=1e-5):
    gamma, beta, mean, var = bn
    scale = gamma / jnp.sqrt(var + eps)
    shift = beta - mean * scale
    return scale, shift


def _fold_pad_1x1(w_oihw, scale, cin_p, cout_p):
    # (O, I, 1, 1) -> (I, O), fold per-output-channel BN scale (f32), pad, bf16.
    wm = w_oihw[:, :, 0, 0].T * scale[None, :]
    wm = jnp.pad(wm, ((0, cin_p - wm.shape[0]), (0, cout_p - wm.shape[1])))
    return wm.astype(jnp.bfloat16)


def _pad_shift(b, n_p):
    return jnp.pad(b, (0, n_p - b.shape[0])).reshape(1, n_p).astype(jnp.float32)


def _prep_conv2_weight(w_oihw, scale, cp, cop, stride):
    # (O, I, 3, 3) -> im2col weight for the unit-stride kernel.
    #   stride 1: (9*cp, cop)   (3x3 conv as-is)
    #   stride 2: (16*cp, cop)  (2x2 conv over the 4*cp space-to-depth channels)
    cin, cout = w_oihw.shape[1], w_oihw.shape[0]
    wt = jnp.transpose(w_oihw, (2, 3, 1, 0)) * scale[None, None, None, :]
    wt = jnp.pad(wt, ((0, 0), (0, 0), (0, cp - cin), (0, cop - cout)))  # (3,3,cp,cop)
    if stride == 1:
        wk = wt.reshape(3 * 3 * cp, cop)
        kh, kw, ck = 3, 3, cp
    else:
        # tap (dh,dw) of the stride-2 3x3 conv maps to block (dh//2, dw//2),
        # phase (dh%2, dw%2) of a stride-1 2x2 conv on space-to-depth input.
        wk4 = jnp.zeros((2, 2, 2, 2, cp, cop), wt.dtype)   # (bh,bw,ph,pw,c,o)
        for dh in range(3):
            for dw in range(3):
                wk4 = wk4.at[dh // 2, dw // 2, dh % 2, dw % 2].set(wt[dh, dw])
        wk = wk4.reshape(2, 2, 4 * cp, cop).reshape(2 * 2 * 4 * cp, cop)
        kh, kw, ck = 2, 2, 4 * cp
    return wk.astype(jnp.bfloat16), kh, kw, ck


def _pad_halo(out1):
    # conv padding=1 halo (stride-1 case).
    return jnp.pad(out1, ((0, 0), (1, 1), (1, 1), (0, 0)))


def _space_to_depth_pad(out1):
    # conv padding=1 halo, rounded up to even spatial dims, then 2x2
    # space-to-depth so the stride-2 conv becomes unit-stride.
    n, h, w, cp = out1.shape
    hp, wp = h + 2, w + 2
    hp2, wp2 = hp + (hp % 2), wp + (wp % 2)
    xp = jnp.pad(out1, ((0, 0), (1, 1 + hp2 - hp), (1, 1 + wp2 - wp), (0, 0)))
    hb, wb = hp2 // 2, wp2 // 2
    xd = xp.reshape(n, hb, 2, wb, 2, cp)
    xd = jnp.transpose(xd, (0, 1, 3, 2, 4, 5)).reshape(n, hb, wb, 4 * cp)
    return xd


def bottleneck_block(x_nchw, params, stride, downsample_flag):
    assert stride in (1, 2), "ResNet bottleneck uses stride 1 or 2"
    n, c, h, w = x_nchw.shape
    cout = params["w3"].shape[0]                 # 4 * c
    cp = _round_up(c, _LANES)
    cop = _round_up(cout, _LANES)
    ho = (h + 2 - 3) // stride + 1
    wo = (w + 2 - 3) // stride + 1

    # layout glue: NCHW -> NHWC, zero-pad channels to lane multiple, bf16
    x = jnp.transpose(x_nchw, (0, 2, 3, 1))
    x = jnp.pad(x, ((0, 0), (0, 0), (0, 0), (0, cp - c))).astype(jnp.bfloat16)

    # fold BN scales (f32) into conv weights on the host; keep per-chan shifts
    s1, b1 = _bn_fold(params["bn1"])
    s2, b2 = _bn_fold(params["bn2"])
    s3, b3 = _bn_fold(params["bn3"])
    w1 = _fold_pad_1x1(params["w1"], s1, cp, cp)
    w3 = _fold_pad_1x1(params["w3"], s3, cp, cop)
    b1p, b2p, b3p = _pad_shift(b1, cp), _pad_shift(b2, cp), _pad_shift(b3, cop)

    # conv1 (1x1) + bn1 + relu : flat (N*H*W, Cp) matmul, bf16 output
    out1 = matmul_shift_relu(x.reshape(n * h * w, cp), w1, b1p,
                             out_dtype=jnp.bfloat16)
    out1 = out1.reshape(n, h, w, cp)

    # conv2 (3x3, stride, pad=1) + bn2 + relu : single fused im2col dot / image
    w2k, kh, kw, _ = _prep_conv2_weight(params["w2"], s2, cp, cp, stride)
    xk = _pad_halo(out1) if stride == 1 else _space_to_depth_pad(out1)
    out2 = conv2_bn_relu(xk, w2k, b2p, kh=kh, kw=kw, ho=ho, wo=wo)
    out2 = out2.reshape(n * ho * wo, cp)         # bf16

    # conv3 (1x1) + bn3 + residual + relu, fused in a single kernel
    if downsample_flag:
        sd, bd = _bn_fold(params["bnd"])
        wd = _fold_pad_1x1(params["wd"], sd, cp, cop)
        bdp = _pad_shift(bd, cop)
        res = x[:, ::stride, ::stride, :].reshape(n * ho * wo, cp)
        out = matmul_shift_ds_add_relu(out2, w3, b3p, res, wd, bdp)
    else:
        # Identity residual mirrors the PyTorch module, which requires matching
        # channel counts (impossible with channel_expansion=4) and stride == 1.
        if stride != 1 or c != cout:
            raise ValueError("identity residual path requires stride == 1 and "
                             "in_channels == expansion * in_channels")
        res = x.reshape(n * h * w, cp)
        out = matmul_shift_add_relu(out2, w3, b3p, res)

    out = out.reshape(n, ho, wo, cop)[..., :cout]
    return jnp.transpose(out, (0, 3, 1, 2))      # back to NCHW


# ------------------------ deterministic parameter init ---------------------

def init_params(key, in_channels, downsample_flag, dtype=jnp.float32):
    c = in_channels
    co = c * 4  # channel_expansion = 4
    ks = jax.random.split(key, 20)

    def conv_w(k, cout, cin, kh, kw):
        bound = 1.0 / np.sqrt(cin * kh * kw)
        return jax.random.uniform(k, (cout, cin, kh, kw), dtype, -bound, bound)

    def bn_p(k, ch):
        k1, k2, k3, k4 = jax.random.split(k, 4)
        gamma = jax.random.uniform(k1, (ch,), dtype, 0.5, 1.5)
        beta = jax.random.uniform(k2, (ch,), dtype, -0.5, 0.5)
        mean = jax.random.uniform(k3, (ch,), dtype, -0.5, 0.5)
        var = jax.random.uniform(k4, (ch,), dtype, 0.5, 1.5)
        return gamma, beta, mean, var

    params = {
        "w1": conv_w(ks[0], c, c, 1, 1), "bn1": bn_p(ks[1], c),
        "w2": conv_w(ks[2], c, c, 3, 3), "bn2": bn_p(ks[3], c),
        "w3": conv_w(ks[4], co, c, 1, 1), "bn3": bn_p(ks[5], co),
    }
    if downsample_flag:
        params["wd"] = conv_w(ks[6], co, c, 1, 1)
        params["bnd"] = bn_p(ks[7], co)
    return params


# ------------------------------ pure-JAX reference -------------------------

def _reference(x, params, stride, downsample_flag, eps=1e-5):
    def conv(t, wgt, s, p):
        return jax.lax.conv_general_dilated(
            t, wgt, (s, s), ((p, p), (p, p)),
            dimension_numbers=("NCHW", "OIHW", "NCHW"))

    def bn(t, p):
        gamma, beta, mean, var = p
        inv = gamma / jnp.sqrt(var + eps)
        return t * inv[None, :, None, None] + (beta - mean * inv)[None, :, None, None]

    relu = lambda t: jnp.maximum(t, 0.0)
    out = relu(bn(conv(x, params["w1"], 1, 0), params["bn1"]))
    out = relu(bn(conv(out, params["w2"], stride, 1), params["bn2"]))
    main = bn(conv(out, params["w3"], 1, 0), params["bn3"])
    if downsample_flag:
        res = bn(conv(x, params["wd"], stride, 0), params["bnd"])
    else:
        res = x
    return relu(main + res)


# ----------------------------------- main -----------------------------------

if __name__ == "__main__":
    key = jax.random.PRNGKey(0)
    kx, kp = jax.random.split(key)

    N, C, H, W = 2, 4, 16, 16
    stride = 2
    downsample_flag = True   # identity path needs C == 4*C, so (as in the
                             # PyTorch module) only the downsample form is usable

    x = jax.random.normal(kx, (N, C, H, W), jnp.float32)
    params = init_params(kp, C, downsample_flag)

    fwd = jax.jit(bottleneck_block, static_argnames=("stride", "downsample_flag"))
    out = fwd(x, params, stride=stride, downsample_flag=downsample_flag)
    out = jax.block_until_ready(out)

    ref = jax.block_until_ready(_reference(x, params, stride, downsample_flag))

    assert out.shape == (N, 4 * C, H // stride, W // stride), out.shape
    # Tolerance sized for bf16 MXU operands / bf16 intermediate activations
    # (f32 accumulation) through three chained conv+BN layers vs. the all-f32
    # reference.
    np.testing.assert_allclose(np.asarray(out), np.asarray(ref),
                               rtol=2e-2, atol=2e-1)
    print("KERNEL_OK")
</pallas_src>

<mosaic_0001>
module attributes {stable_mosaic.version = 11 : i64} {
  func.func @_mm_shift_relu_kernel(%arg0: i32, %arg1: i32, %arg2: memref<256x128xbf16, #tpu.memory_space<vmem>>, %arg3: memref<128x128xbf16, #tpu.memory_space<vmem>>, %arg4: memref<1x128xf32, #tpu.memory_space<vmem>>, %arg5: memref<256x128xbf16, #tpu.memory_space<vmem>>) attributes {dimension_semantics = [#tpu.dimension_semantics<parallel>, #tpu.dimension_semantics<parallel>], iteration_bounds = array<i64: 2, 1>, scalar_prefetch = 0 : i64, scratch_operands = 0 : i64, tpu.core_type = #tpu.core_type<tc>, window_params = [{transform_indices = @transform_0, window_bounds = array<i64: 256, 128>}, {transform_indices = @transform_1, window_bounds = array<i64: 128, 128>}, {transform_indices = @transform_2, window_bounds = array<i64: 1, 128>}, {transform_indices = @transform_3, window_bounds = array<i64: 256, 128>}]} {
    %c0 = arith.constant 0 : index
    %c0_0 = arith.constant 0 : index
    %0 = vector.load %arg2[%c0, %c0_0] : memref<256x128xbf16, #tpu.memory_space<vmem>>, vector<256x128xbf16>
    %c0_1 = arith.constant 0 : index
    %c0_2 = arith.constant 0 : index
    %1 = vector.load %arg3[%c0_1, %c0_2] : memref<128x128xbf16, #tpu.memory_space<vmem>>, vector<128x128xbf16>
    %cst = arith.constant dense<0.000000e+00> : vector<256x128xf32>
    %2 = tpu.matmul %0, %1, %cst {dimension_numbers = #tpu.dot_dimension_numbers<[1], [0], [0], [1], [0, 0, 1, 1], [], []>} : vector<256x128xbf16>, vector<128x128xbf16>, vector<256x128xf32> -> vector<256x128xf32>
    %c0_3 = arith.constant 0 : index
    %c0_4 = arith.constant 0 : index
    %3 = vector.load %arg4[%c0_3, %c0_4] : memref<1x128xf32, #tpu.memory_space<vmem>>, vector<1x128xf32>
    %4 = vector.broadcast %3 : vector<1x128xf32> to vector<256x128xf32>
    %5 = arith.addf %2, %4 : vector<256x128xf32>
    %cst_5 = arith.constant 0.000000e+00 : f32
    %6 = vector.broadcast %cst_5 : f32 to vector<256x128xf32>
    %7 = arith.maximumf %5, %6 : vector<256x128xf32>
    %8 = arith.truncf %7 : vector<256x128xf32> to vector<256x128xbf16>
    %c0_6 = arith.constant 0 : index
    %c0_7 = arith.constant 0 : index
    %9 = vector.load %arg5[%c0_6, %c0_7] : memref<256x128xbf16, #tpu.memory_space<vmem>>, vector<256x128xbf16>
    tpu.vector_store %arg5[%c0_6, %c0_7], %8 {strides = array<i32>} : memref<256x128xbf16, #tpu.memory_space<vmem>>, vector<256x128xbf16>,
    return
  }
  func.func @transform_0(%arg0: i32, %arg1: i32) -> (i32, i32) {
    %c0_i32 = arith.constant 0 : i32
    %c0_i32_0 = arith.constant 0 : i32
    return %arg0, %c0_i32 : i32, i32
  }
  func.func @transform_1(%arg0: i32, %arg1: i32) -> (i32, i32) {
    %c0_i32 = arith.constant 0 : i32
    %c0_i32_0 = arith.constant 0 : i32
    return %c0_i32, %arg1 : i32, i32
  }
  func.func @transform_2(%arg0: i32, %arg1: i32) -> (i32, i32) {
    %c0_i32 = arith.constant 0 : i32
    %c0_i32_0 = arith.constant 0 : i32
    return %c0_i32, %arg1 : i32, i32
  }
  func.func @transform_3(%arg0: i32, %arg1: i32) -> (i32, i32) {
    %c0_i32 = arith.constant 0 : i32
    return %arg0, %arg1 : i32, i32
  }
}

module attributes {stable_mosaic.version = 11 : i64} {
  func.func @_conv_unit_stride_kernel(%arg0: i32, %arg1: memref<1x9x9x512xbf16, #tpu.memory_space<vmem>>, %arg2: memref<2048x128xbf16, #tpu.memory_space<vmem>>, %arg3: memref<1x128xf32, #tpu.memory_space<vmem>>, %arg4: memref<1x64x128xbf16, #tpu.memory_space<vmem>>) attributes {dimension_semantics = [#tpu.dimension_semantics<parallel>], iteration_bounds = array<i64: 2>, scalar_prefetch = 0 : i64, scratch_operands = 0 : i64, tpu.core_type = #tpu.core_type<tc>, window_params = [{transform_indices = @transform_0, window_bounds = array<i64: 1, 9, 9, 512>}, {pipeline_mode = #tpu.pipeline_mode<synchronous>, transform_indices = @transform_1, window_bounds = array<i64: 2048, 128>}, {pipeline_mode = #tpu.pipeline_mode<synchronous>, transform_indices = @transform_2, window_bounds = array<i64: 1, 128>}, {transform_indices = @transform_3, window_bounds = array<i64: 1, 64, 128>}]} {
    %c0 = arith.constant 0 : index
    %c0_0 = arith.constant 0 : index
    %c0_1 = arith.constant 0 : index
    %c0_2 = arith.constant 0 : index
    %0 = vector.load %arg1[%c0, %c0_0, %c0_1, %c0_2] : memref<1x9x9x512xbf16, #tpu.memory_space<vmem>>, vector<1x9x9x512xbf16>
    %1 = vector.shape_cast %0 : vector<1x9x9x512xbf16> to vector<9x9x512xbf16>
    %2 = vector.extract_strided_slice %1 {offsets = [0, 0, 0], sizes = [8, 8, 512], strides = [1, 1, 1]} : vector<9x9x512xbf16> to vector<8x8x512xbf16>
    %3 = vector.shape_cast %2 : vector<8x8x512xbf16> to vector<64x512xbf16>
    %4 = vector.extract_strided_slice %1 {offsets = [0, 1, 0], sizes = [8, 8, 512], strides = [1, 1, 1]} : vector<9x9x512xbf16> to vector<8x8x512xbf16>
    %5 = vector.shape_cast %4 : vector<8x8x512xbf16> to vector<64x512xbf16>
    %6 = vector.extract_strided_slice %1 {offsets = [1, 0, 0], sizes = [8, 8, 512], strides = [1, 1, 1]} : vector<9x9x512xbf16> to vector<8x8x512xbf16>
    %7 = vector.shape_cast %6 : vector<8x8x512xbf16> to vector<64x512xbf16>
    %8 = vector.extract_strided_slice %1 {offsets = [1, 1, 0], sizes = [8, 8, 512], strides = [1, 1, 1]} : vector<9x9x512xbf16> to vector<8x8x512xbf16>
    %9 = vector.shape_cast %8 : vector<8x8x512xbf16> to vector<64x512xbf16>
    %10 = tpu.concatenate %3, %5, %7, %9 in 1 : vector<64x512xbf16>, vector<64x512xbf16>, vector<64x512xbf16>, vector<64x512xbf16> -> vector<64x2048xbf16>
    %c0_3 = arith.constant 0 : index
    %c0_4 = arith.constant 0 : index
    %11 = vector.load %arg2[%c0_3, %c0_4] : memref<2048x128xbf16, #tpu.memory_space<vmem>>, vector<2048x128xbf16>
    %cst = arith.constant dense<0.000000e+00> : vector<64x128xf32>
    %12 = tpu.matmul %10, %11, %cst {dimension_numbers = #tpu.dot_dimension_numbers<[1], [0], [0], [1], [0, 0, 1, 1], [], []>} : vector<64x2048xbf16>, vector<2048x128xbf16>, vector<64x128xf32> -> vector<64x128xf32>
    %c0_5 = arith.constant 0 : index
    %c0_6 = arith.constant 0 : index
    %13 = vector.load %arg3[%c0_5, %c0_6] : memref<1x128xf32, #tpu.memory_space<vmem>>, vector<1x128xf32>
    %14 = vector.broadcast %13 : vector<1x128xf32> to vector<64x128xf32>
    %15 = arith.addf %12, %14 : vector<64x128xf32>
    %cst_7 = arith.constant 0.000000e+00 : f32
    %16 = vector.broadcast %cst_7 : f32 to vector<64x128xf32>
    %17 = arith.maximumf %15, %16 : vector<64x128xf32>
    %18 = arith.truncf %17 : vector<64x128xf32> to vector<64x128xbf16>
    %c0_8 = arith.constant 0 : index
    %c0_9 = arith.constant 0 : index
    %c0_10 = arith.constant 0 : index
    %19 = vector.load %arg4[%c0_8, %c0_9, %c0_10] : memref<1x64x128xbf16, #tpu.memory_space<vmem>>, vector<1x64x128xbf16>
    %20 = vector.shape_cast %19 : vector<1x64x128xbf16> to vector<64x128xbf16>
    %21 = vector.shape_cast %18 : vector<64x128xbf16> to vector<1x64x128xbf16>
    tpu.vector_store %arg4[%c0_8, %c0_9, %c0_10], %21 {strides = array<i32>} : memref<1x64x128xbf16, #tpu.memory_space<vmem>>, vector<1x64x128xbf16>,
    return
  }
  func.func @transform_0(%arg0: i32) -> (i32, i32, i32, i32) {
    %c0_i32 = arith.constant 0 : i32
    %c0_i32_0 = arith.constant 0 : i32
    %c0_i32_1 = arith.constant 0 : i32
    %c0_i32_2 = arith.constant 0 : i32
    return %arg0, %c0_i32, %c0_i32_0, %c0_i32_1 : i32, i32, i32, i32
  }
  func.func @transform_1(%arg0: i32) -> (i32, i32) {
    %c0_i32 = arith.constant 0 : i32
    %c0_i32_0 = arith.constant 0 : i32
    %c0_i32_1 = arith.constant 0 : i32
    return %c0_i32, %c0_i32_0 : i32, i32
  }
  func.func @transform_2(%arg0: i32) -> (i32, i32) {
    %c0_i32 = arith.constant 0 : i32
    %c0_i32_0 = arith.constant 0 : i32
    %c0_i32_1 = arith.constant 0 : i32
    return %c0_i32, %c0_i32_0 : i32, i32
  }
  func.func @transform_3(%arg0: i32) -> (i32, i32, i32) {
    %c0_i32 = arith.constant 0 : i32
    %c0_i32_0 = arith.constant 0 : i32
    %c0_i32_1 = arith.constant 0 : i32
    return %arg0, %c0_i32, %c0_i32_0 : i32, i32, i32
  }
}

module attributes {stable_mosaic.version = 11 : i64} {
  func.func @_mm_shift_ds_add_relu_kernel(%arg0: i32, %arg1: i32, %arg2: memref<64x128xbf16, #tpu.memory_space<vmem>>, %arg3: memref<128x128xbf16, #tpu.memory_space<vmem>>, %arg4: memref<1x128xf32, #tpu.memory_space<vmem>>, %arg5: memref<64x128xbf16, #tpu.memory_space<vmem>>, %arg6: memref<128x128xbf16, #tpu.memory_space<vmem>>, %arg7: memref<1x128xf32, #tpu.memory_space<vmem>>, %arg8: memref<64x128xf32, #tpu.memory_space<vmem>>) attributes {dimension_semantics = [#tpu.dimension_semantics<parallel>, #tpu.dimension_semantics<parallel>], iteration_bounds = array<i64: 2, 1>, scalar_prefetch = 0 : i64, scratch_operands = 0 : i64, tpu.core_type = #tpu.core_type<tc>, window_params = [{transform_indices = @transform_0, window_bounds = array<i64: 64, 128>}, {transform_indices = @transform_1, window_bounds = array<i64: 128, 128>}, {transform_indices = @transform_2, window_bounds = array<i64: 1, 128>}, {transform_indices = @transform_3, window_bounds = array<i64: 64, 128>}, {transform_indices = @transform_4, window_bounds = array<i64: 128, 128>}, {transform_indices = @transform_5, window_bounds = array<i64: 1, 128>}, {transform_indices = @transform_6, window_bounds = array<i64: 64, 128>}]} {
    %c0 = arith.constant 0 : index
    %c0_0 = arith.constant 0 : index
    %0 = vector.load %arg2[%c0, %c0_0] : memref<64x128xbf16, #tpu.memory_space<vmem>>, vector<64x128xbf16>
    %c0_1 = arith.constant 0 : index
    %c0_2 = arith.constant 0 : index
    %1 = vector.load %arg3[%c0_1, %c0_2] : memref<128x128xbf16, #tpu.memory_space<vmem>>, vector<128x128xbf16>
    %cst = arith.constant dense<0.000000e+00> : vector<64x128xf32>
    %2 = tpu.matmul %0, %1, %cst {dimension_numbers = #tpu.dot_dimension_numbers<[1], [0], [0], [1], [0, 0, 1, 1], [], []>} : vector<64x128xbf16>, vector<128x128xbf16>, vector<64x128xf32> -> vector<64x128xf32>
    %c0_3 = arith.constant 0 : index
    %c0_4 = arith.constant 0 : index
    %3 = vector.load %arg4[%c0_3, %c0_4] : memref<1x128xf32, #tpu.memory_space<vmem>>, vector<1x128xf32>
    %4 = vector.broadcast %3 : vector<1x128xf32> to vector<64x128xf32>
    %5 = arith.addf %2, %4 : vector<64x128xf32>
    %c0_5 = arith.constant 0 : index
    %c0_6 = arith.constant 0 : index
    %6 = vector.load %arg5[%c0_5, %c0_6] : memref<64x128xbf16, #tpu.memory_space<vmem>>, vector<64x128xbf16>
    %c0_7 = arith.constant 0 : index
    %c0_8 = arith.constant 0 : index
    %7 = vector.load %arg6[%c0_7, %c0_8] : memref<128x128xbf16, #tpu.memory_space<vmem>>, vector<128x128xbf16>
    %cst_9 = arith.constant dense<0.000000e+00> : vector<64x128xf32>
    %8 = tpu.matmul %6, %7, %cst_9 {dimension_numbers = #tpu.dot_dimension_numbers<[1], [0], [0], [1], [0, 0, 1, 1], [], []>} : vector<64x128xbf16>, vector<128x128xbf16>, vector<64x128xf32> -> vector<64x128xf32>
    %c0_10 = arith.constant 0 : index
    %c0_11 = arith.constant 0 : index
    %9 = vector.load %arg7[%c0_10, %c0_11] : memref<1x128xf32, #tpu.memory_space<vmem>>, vector<1x128xf32>
    %10 = vector.broadcast %9 : vector<1x128xf32> to vector<64x128xf32>
    %11 = arith.addf %8, %10 : vector<64x128xf32>
    %12 = arith.addf %5, %11 : vector<64x128xf32>
    %cst_12 = arith.constant 0.000000e+00 : f32
    %13 = vector.broadcast %cst_12 : f32 to vector<64x128xf32>
    %14 = arith.maximumf %12, %13 : vector<64x128xf32>
    %c0_13 = arith.constant 0 : index
    %c0_14 = arith.constant 0 : index
    %15 = vector.load %arg8[%c0_13, %c0_14] : memref<64x128xf32, #tpu.memory_space<vmem>>, vector<64x128xf32>
    tpu.vector_store %arg8[%c0_13, %c0_14], %14 {strides = array<i32>} : memref<64x128xf32, #tpu.memory_space<vmem>>, vector<64x128xf32>,
    return
  }
  func.func @transform_0(%arg0: i32, %arg1: i32) -> (i32, i32) {
    %c0_i32 = arith.constant 0 : i32
    %c0_i32_0 = arith.constant 0 : i32
    return %arg0, %c0_i32 : i32, i32
  }
  func.func @transform_1(%arg0: i32, %arg1: i32) -> (i32, i32) {
    %c0_i32 = arith.constant 0 : i32
    %c0_i32_0 = arith.constant 0 : i32
    return %c0_i32, %arg1 : i32, i32
  }
  func.func @transform_2(%arg0: i32, %arg1: i32) -> (i32, i32) {
    %c0_i32 = arith.constant 0 : i32
    %c0_i32_0 = arith.constant 0 : i32
    return %c0_i32, %arg1 : i32, i32
  }
  func.func @transform_3(%arg0: i32, %arg1: i32) -> (i32, i32) {
    %c0_i32 = arith.constant 0 : i32
    %c0_i32_0 = arith.constant 0 : i32
    return %arg0, %c0_i32 : i32, i32
  }
  func.func @transform_4(%arg0: i32, %arg1: i32) -> (i32, i32) {
    %c0_i32 = arith.constant 0 : i32
    %c0_i32_0 = arith.constant 0 : i32
    return %c0_i32, %arg1 : i32, i32
  }
  func.func @transform_5(%arg0: i32, %arg1: i32) -> (i32, i32) {
    %c0_i32 = arith.constant 0 : i32
    %c0_i32_0 = arith.constant 0 : i32
    return %c0_i32, %arg1 : i32, i32
  }
  func.func @transform_6(%arg0: i32, %arg1: i32) -> (i32, i32) {
    %c0_i32 = arith.constant 0 : i32
    return %arg0, %arg1 : i32, i32
  }
}

</mosaic_0001>

<bundles_post_ra>
// kernel: bottleneck_block.3
= control target key start
LH: loop header
LB: loop body
LE: loop exit
PB: predicated region body
PF: predicated region fallthrough
CT: control target
= control target key end

     0   :  { %s1257_s12 = smov 0   ;;  %s1259_s13 = smov 0   ;;  %s1394_s0 = inlined_call_operand.vmem [shape: bf16[512,128], index: 0, kind: input, shape index: {}]   ;;  %s1395_s1 = inlined_call_operand.vmem [shape: bf16[128,128], index: 1, kind: input, shape index: {}]   ;;  %s1396_s2 = inlined_call_operand.vmem [shape: f32[1,128], index: 2, kind: input, shape index: {}]   ;;  %s1397_s3 = inlined_call_operand.vmem [shape: bf16[512,128], index: 3, kind: output, shape index: {}]  }
   0x1   :  { %s1261_s14 = smov 0  }
   0x2 LB: > { %s25_s15 = sadd.s32 1, %s1231_s13  ;;  %p886_p0 = scmp.ge.s32.totalorder %s1235_s14, 1  ;;  %s1235_s14 = sphi %s1261_s14, %s13_s14   ;;  %s1231_s13 = sphi %s1259_s13, %s1399_s13   ;;  %s1227_s12 = sphi %s1257_s12, %s1398_s12  }
   0x3   : > { %p27_p1 = scmp.ge.s32.totalorder %s25_s15, 2  ;;  %p169_p2 = scmp.lt.s32.totalorder %s1235_s14, 3 }
   0x5   : > { %s1401_s15 = smov (%p27_p1, %s25_s15), 0  ;;  %p170_p3 = pnand %p886_p0, %p169_p2 }
   0x6   : > { %v1189_v0 = vld [vmem:[%s1395_s1] sm:$0xff] (!%p170_p3)   ;;  %s887_s18 = sshll.u32 (!%p170_p3), %s1227_s12, 5  ;;  %v1190_v1 = vld [vmem:[%s1395_s1 + $0x8] sm:$0xff] (!%p170_p3)   ;;  %v1191_v2 = vld [vmem:[%s1395_s1 + $0x10] sm:$0xff] (!%p170_p3)  }
   0x7   : > { %173 = sbr.rel (%p170_p3) target bundleno = 285 (0x11d), region = 32  ;;  %p204_p4 = scmp.lt.s32.totalorder (!%p170_p3), %s887_s18, 63  ;;  %1101 = vmatprep.subr.bf16.mxu0 (!%p170_p3), %v1189_v0  ;;  %1149 = vmatprep.subr.bf16.mxu1 (!%p170_p3), %v1189_v0  ;;  %v1192_v3 = vld [vmem:[%s1395_s1 + $0x18] sm:$0xff] (!%p170_p3)   ;;  %v1193_v6 = vld [vmem:[%s1395_s1 + $0x20] sm:$0xff] (!%p170_p3)   ;;  %v1194_v7 = vld [vmem:[%s1395_s1 + $0x28] sm:$0xff] (!%p170_p3)  }
   0x8   : > { %1102 = vmatpush3.bf16.msra.mxu0 (!%p170_p3), %v1189_v0  ;;  %1157 = vmatpush3.bf16.msra.mxu1 (!%p170_p3), %v1189_v0  ;;  %v1195_v8 = vld [vmem:[%s1395_s1 + $0x30] sm:$0xff] (!%p170_p3)   ;;  %v1196_v9 = vld [vmem:[%s1395_s1 + $0x38] sm:$0xff] (!%p170_p3)   ;;  %v1328_v24 = vld [vmem:[%s1396_s2] ss:$0 sm:$0xff] (!%p170_p3) }
   0x9   : > { %1103 = vmatprep.subr.bf16.mxu0 (!%p170_p3), %v1190_v1  ;;  %1150 = vmatprep.subr.bf16.mxu1 (!%p170_p3), %v1190_v1 }
   0xc   : > { %1104 = vmatpush3.bf16.msra.mxu0 (!%p170_p3), %v1190_v1  ;;  %1158 = vmatpush3.bf16.msra.mxu1 (!%p170_p3), %v1190_v1 }
   0xd   : > { %1105 = vmatprep.subr.bf16.mxu0 (!%p170_p3), %v1191_v2  ;;  %1151 = vmatprep.subr.bf16.mxu1 (!%p170_p3), %v1191_v2 }
   0xe   : > { %s1403_s18 = smov (!%p204_p4, %s887_s18), 63 }
   0xf   : > { %s888_s23 = sshll.u32 %s1403_s18, 2 }
  0x10   : > { %s1292_s26 = scalar_lea.vmem %s1394_s0, %s888_s23  ;;  %1106 = vmatpush3.bf16.msra.mxu0 %v1191_v2  ;;  %1159 = vmatpush3.bf16.msra.mxu1 %v1191_v2  ;;  %s1343_s17 = scalar_lea.vmem %s1397_s3, %s888_s23 }
  0x11   : > { %v1197_v4 = vld [vmem:[%s1292_s26] sm:$0xff]   ;;  %1107 = vmatprep.subr.bf16.mxu0 %v1192_v3  ;;  %1152 = vmatprep.subr.bf16.mxu1 %v1192_v3  ;;  %v1199_v10 = vld [vmem:[%s1292_s26 + $0x8] sm:$0xff]   ;;  %v1201_v12 = vld [vmem:[%s1292_s26 + $0x10] sm:$0xff]  }
  0x12   : > { %v1198_v5 = vld [vmem:[%s1292_s26 + $0x40] sm:$0xff]   ;;  %1117 = vmatprep.mubr.bf16.mxu0 %v1197_v4  ;;  %v1200_v11 = vld [vmem:[%s1292_s26 + $0x48] sm:$0xff]   ;;  %v1202_v13 = vld [vmem:[%s1292_s26 + $0x50] sm:$0xff]  }
  0x13   : > { %1133 = vmatprep.mubr.bf16.mxu1 %v1198_v5  ;;  %v1203_v14 = vld [vmem:[%s1292_s26 + $0x18] sm:$0xff]   ;;  %v1205_v16 = vld [vmem:[%s1292_s26 + $0x20] sm:$0xff]   ;;  %v1207_v18 = vld [vmem:[%s1292_s26 + $0x28] sm:$0xff]  }
  0x14   : > { %1108 = vmatpush3.bf16.msra.mxu0 %v1192_v3  ;;  %1160 = vmatpush3.bf16.msra.mxu1 %v1192_v3  ;;  %v1204_v15 = vld [vmem:[%s1292_s26 + $0x58] sm:$0xff]   ;;  %v1206_v17 = vld [vmem:[%s1292_s26 + $0x60] sm:$0xff]   ;;  %v1208_v19 = vld [vmem:[%s1292_s26 + $0x68] sm:$0xff]  }
  0x15   : > { %1109 = vmatprep.subr.bf16.mxu0 %v1193_v6  ;;  %1153 = vmatprep.subr.bf16.mxu1 %v1193_v6  ;;  %v1209_v20 = vld [vmem:[%s1292_s26 + $0x30] sm:$0xff]   ;;  %v1211_v22 = vld [vmem:[%s1292_s26 + $0x38] sm:$0xff]  }
  0x16   : > { %v1210_v21 = vld [vmem:[%s1292_s26 + $0x70] sm:$0xff]   ;;  %v1212_v23 = vld [vmem:[%s1292_s26 + $0x78] sm:$0xff]  }
  0x18   : > { %1110 = vmatpush3.bf16.msra.mxu0 %v1193_v6  ;;  %1161 = vmatpush3.bf16.msra.mxu1 %v1193_v6 }
  0x19   : > { %1111 = vmatprep.subr.bf16.mxu0 %v1194_v7  ;;  %1154 = vmatprep.subr.bf16.mxu1 %v1194_v7 }
  0x1c   : > { %1112 = vmatpush3.bf16.msra.mxu0 %v1194_v7  ;;  %1162 = vmatpush3.bf16.msra.mxu1 %v1194_v7 }
  0x1d   : > { %1113 = vmatprep.subr.bf16.mxu0 %v1195_v8  ;;  %1155 = vmatprep.subr.bf16.mxu1 %v1195_v8 }
  0x20   : > { %1114 = vmatpush3.bf16.msra.mxu0 %v1195_v8  ;;  %1163 = vmatpush3.bf16.msra.mxu1 %v1195_v8 }
  0x21   : > { %1115 = vmatprep.subr.bf16.mxu0 %v1196_v9  ;;  %1156 = vmatprep.subr.bf16.mxu1 %v1196_v9 }
  0x24   : > { %1116 = vmatpush3.bf16.msra.mxu0 %v1196_v9  ;;  %1164 = vmatpush3.bf16.msra.mxu1 %v1196_v9 }
  0x27   : > { %1118 = vmatmul.mubr.bf16.vlgmr.msra.gmra.mrb[0].mxu0 %v1199_v10  ;;  %1134 = vmatmul.mubr.bf16.vlgmr.msra.gmra.mrb[0].mxu1 %v1200_v11 }
  0x28   : > { %1121 = vmatprep.mubr.bf16.mxu0 %v1201_v12  ;;  %1137 = vmatprep.mubr.bf16.mxu1 %v1202_v13 }
  0x2f   : > { %1122 = vmatmul.mubr.bf16.gmra.mrb[4].mxu0 %v1203_v14  ;;  %1138 = vmatmul.mubr.bf16.gmra.mrb[4].mxu1 %v1204_v15 }
  0x30   : > { %1125 = vmatprep.mubr.bf16.mxu0 %v1205_v16  ;;  %1141 = vmatprep.mubr.bf16.mxu1 %v1206_v17 }
  0x37   : > { %1126 = vmatmul.mubr.bf16.gmra.mrb[8].mxu0 %v1207_v18  ;;  %1142 = vmatmul.mubr.bf16.gmra.mrb[8].mxu1 %v1208_v19 }
  0x38   : > { %1129 = vmatprep.mubr.bf16.mxu0 %v1209_v20  ;;  %1145 = vmatprep.mubr.bf16.mxu1 %v1210_v21 }
  0x3f   : > { %1130 = vmatmul.mubr.bf16.gmra.mrb[12].mxu0 %v1211_v22  ;;  %1146 = vmatmul.mubr.bf16.gmra.mrb[12].mxu1 %v1212_v23 }
  0xfa   : > { %v1119_v25 = vpop.f32.mrb[0].mxu0  ;;  %v1135_v26 = vpop.f32.mrb[0].mxu1 }
  0xfb   : > { %v468_v27 = vadd.f32 %v1119_v25, %v1328_v24  ;;  %v532_v28 = vadd.f32 %v1135_v26, %v1328_v24  ;;  %v459_v29 = vpop.f32.mrb[1].mxu0  ;;  %v523_v30 = vpop.f32.mrb[1].mxu1 }
  0xfc   : > { %v460_v31 = vadd.f32 %v1328_v24, %v459_v29  ;;  %v524_v32 = vadd.f32 %v1328_v24, %v523_v30  ;;  %v1120_v33 = vpop.f32.mrb[2].mxu0  ;;  %v1136_v34 = vpop.f32.mrb[2].mxu1 }
  0xfd   : > { %v471_v35 = vadd.f32 %v1120_v33, %v1328_v24  ;;  %v535_v36 = vadd.f32 %v1136_v34, %v1328_v24  ;;  %v462_v37 = vpop.f32.mrb[3].mxu0  ;;  %v526_v38 = vpop.f32.mrb[3].mxu1  ;;  %v588_v41 = vmax.f32 %v468_v27, 0.0  ;;  %v604_v42 = vmax.f32 %v532_v28, 0.0 }
  0xfe   : > { %v463_v39 = vadd.f32 %v1328_v24, %v462_v37  ;;  %v527_v40 = vadd.f32 %v1328_v24, %v526_v38  ;;  %v586_v45 = vmax.f32 %v460_v31, 0.0  ;;  %v602_v46 = vmax.f32 %v524_v32, 0.0 }
  0xff   : > { %v589_v43 = vmax.f32 %v471_v35, 0.0  ;;  %v605_v44 = vmax.f32 %v535_v36, 0.0 }
 0x100   : > { %v587_v47 = vmax.f32 %v463_v39, 0.0  ;;  %v603_v48 = vmax.f32 %v527_v40, 0.0 }
 0x101   : > { %v990_v49 = vpack.c.bf16 %v589_v43, %v588_v41  ;;  %v1030_v50 = vpack.c.bf16 %v605_v44, %v604_v42 }
 0x102   : > { %v985_v51 = vpack.c.bf16 %v587_v47, %v586_v45  ;;  %v1025_v52 = vpack.c.bf16 %v603_v48, %v602_v46  ;;  %v1123_v53 = vpop.f32.mrb[4].mxu0  ;;  %v1139_v54 = vpop.f32.mrb[4].mxu1 }
 0x103   : > { %1062 = vst [vmem:[%s1343_s17 + $0x8] sm:$0xff] %v990_v49   ;;  %1070 = vst [vmem:[%s1343_s17 + $0x48] sm:$0xff] %v1030_v50   ;;  %v484_v55 = vadd.f32 %v1123_v53, %v1328_v24  ;;  %v548_v56 = vadd.f32 %v1139_v54, %v1328_v24  ;;  %v475_v57 = vpop.f32.mrb[5].mxu0  ;;  %v539_v58 = vpop.f32.mrb[5].mxu1 }
 0x104   : > { %986 = vst [vmem:[%s1343_s17] sm:$0xff] %v985_v51   ;;  %1069 = vst [vmem:[%s1343_s17 + $0x40] sm:$0xff] %v1025_v52   ;;  %v476_v59 = vadd.f32 %v1328_v24, %v475_v57  ;;  %v540_v60 = vadd.f32 %v1328_v24, %v539_v58  ;;  %v1124_v61 = vpop.f32.mrb[6].mxu0  ;;  %v1140_v62 = vpop.f32.mrb[6].mxu1 }
 0x105   : > { %v487_v63 = vadd.f32 %v1124_v61, %v1328_v24  ;;  %v551_v0 = vadd.f32 %v1140_v62, %v1328_v24  ;;  %v478_v1 = vpop.f32.mrb[7].mxu0  ;;  %v542_v2 = vpop.f32.mrb[7].mxu1  ;;  %v592_v5 = vmax.f32 %v484_v55, 0.0  ;;  %v608_v6 = vmax.f32 %v548_v56, 0.0 }
 0x106   : > { %v479_v3 = vadd.f32 %v1328_v24, %v478_v1  ;;  %v543_v4 = vadd.f32 %v1328_v24, %v542_v2  ;;  %v590_v9 = vmax.f32 %v476_v59, 0.0  ;;  %v606_v10 = vmax.f32 %v540_v60, 0.0 }
 0x107   : > { %v593_v7 = vmax.f32 %v487_v63, 0.0  ;;  %v609_v8 = vmax.f32 %v551_v0, 0.0 }
 0x108   : > { %v591_v11 = vmax.f32 %v479_v3, 0.0  ;;  %v607_v12 = vmax.f32 %v543_v4, 0.0 }
 0x109   : > { %v1000_v13 = vpack.c.bf16 %v593_v7, %v592_v5  ;;  %v1040_v14 = vpack.c.bf16 %v609_v8, %v608_v6 }
 0x10a   : > { %v995_v15 = vpack.c.bf16 %v591_v11, %v590_v9  ;;  %v1035_v16 = vpack.c.bf16 %v607_v12, %v606_v10  ;;  %v1127_v17 = vpop.f32.mrb[8].mxu0  ;;  %v1143_v18 = vpop.f32.mrb[8].mxu1 }
 0x10b   : > { %1064 = vst [vmem:[%s1343_s17 + $0x18] sm:$0xff] %v1000_v13   ;;  %1072 = vst [vmem:[%s1343_s17 + $0x58] sm:$0xff] %v1040_v14   ;;  %v500_v19 = vadd.f32 %v1127_v17, %v1328_v24  ;;  %v564_v20 = vadd.f32 %v1143_v18, %v1328_v24  ;;  %v491_v21 = vpop.f32.mrb[9].mxu0  ;;  %v555_v22 = vpop.f32.mrb[9].mxu1 }
 0x10c   : > { %1063 = vst [vmem:[%s1343_s17 + $0x10] sm:$0xff] %v995_v15   ;;  %1071 = vst [vmem:[%s1343_s17 + $0x50] sm:$0xff] %v1035_v16   ;;  %v492_v23 = vadd.f32 %v1328_v24, %v491_v21  ;;  %v556_v25 = vadd.f32 %v1328_v24, %v555_v22  ;;  %v1128_v26 = vpop.f32.mrb[10].mxu0  ;;  %v1144_v27 = vpop.f32.mrb[10].mxu1 }
 0x10d   : > { %v503_v28 = vadd.f32 %v1128_v26, %v1328_v24  ;;  %v567_v29 = vadd.f32 %v1144_v27, %v1328_v24  ;;  %v494_v30 = vpop.f32.mrb[11].mxu0  ;;  %v558_v31 = vpop.f32.mrb[11].mxu1  ;;  %v596_v34 = vmax.f32 %v500_v19, 0.0  ;;  %v612_v35 = vmax.f32 %v564_v20, 0.0 }
 0x10e   : > { %v495_v32 = vadd.f32 %v1328_v24, %v494_v30  ;;  %v559_v33 = vadd.f32 %v1328_v24, %v558_v31  ;;  %v594_v38 = vmax.f32 %v492_v23, 0.0  ;;  %v610_v39 = vmax.f32 %v556_v25, 0.0 }
 0x10f   : > { %v597_v36 = vmax.f32 %v503_v28, 0.0  ;;  %v613_v37 = vmax.f32 %v567_v29, 0.0 }
 0x110   : > { %v595_v40 = vmax.f32 %v495_v32, 0.0  ;;  %v611_v41 = vmax.f32 %v559_v33, 0.0 }
 0x111   : > { %v1010_v42 = vpack.c.bf16 %v597_v36, %v596_v34  ;;  %v1050_v43 = vpack.c.bf16 %v613_v37, %v612_v35 }
 0x112   : > { %v1005_v44 = vpack.c.bf16 %v595_v40, %v594_v38  ;;  %v1045_v45 = vpack.c.bf16 %v611_v41, %v610_v39  ;;  %v1131_v46 = vpop.f32.mrb[12].mxu0  ;;  %v1147_v47 = vpop.f32.mrb[12].mxu1 }
 0x113   : > { %1066 = vst [vmem:[%s1343_s17 + $0x28] sm:$0xff] %v1010_v42   ;;  %1074 = vst [vmem:[%s1343_s17 + $0x68] sm:$0xff] %v1050_v43   ;;  %v516_v48 = vadd.f32 %v1131_v46, %v1328_v24  ;;  %v580_v49 = vadd.f32 %v1147_v47, %v1328_v24  ;;  %v507_v50 = vpop.f32.mrb[13].mxu0  ;;  %v571_v51 = vpop.f32.mrb[13].mxu1 }
 0x114   : > { %1065 = vst [vmem:[%s1343_s17 + $0x20] sm:$0xff] %v1005_v44   ;;  %1073 = vst [vmem:[%s1343_s17 + $0x60] sm:$0xff] %v1045_v45   ;;  %v508_v52 = vadd.f32 %v1328_v24, %v507_v50  ;;  %v572_v53 = vadd.f32 %v1328_v24, %v571_v51  ;;  %v1132_v54 = vpop.f32.mrb[14].mxu0  ;;  %v1148_v55 = vpop.f32.mrb[14].mxu1 }
 0x115   : > { %v519_v56 = vadd.f32 %v1132_v54, %v1328_v24  ;;  %v583_v57 = vadd.f32 %v1148_v55, %v1328_v24  ;;  %v510_v58 = vpop.f32.mrb[15].mxu0  ;;  %v574_v59 = vpop.f32.mrb[15].mxu1  ;;  %v600_v62 = vmax.f32 %v516_v48, 0.0  ;;  %v616_v63 = vmax.f32 %v580_v49, 0.0 }
 0x116   : > { %v511_v60 = vadd.f32 %v1328_v24, %v510_v58  ;;  %v575_v61 = vadd.f32 %v1328_v24, %v574_v59  ;;  %v598_v2 = vmax.f32 %v508_v52, 0.0  ;;  %v614_v3 = vmax.f32 %v572_v53, 0.0 }
 0x117   : > { %v601_v0 = vmax.f32 %v519_v56, 0.0  ;;  %v617_v1 = vmax.f32 %v583_v57, 0.0 }
 0x118   : > { %v599_v4 = vmax.f32 %v511_v60, 0.0  ;;  %v615_v5 = vmax.f32 %v575_v61, 0.0 }
 0x119   : > { %v1020_v6 = vpack.c.bf16 %v601_v0, %v600_v62  ;;  %v1060_v7 = vpack.c.bf16 %v617_v1, %v616_v63 }
 0x11a   : > { %v1015_v8 = vpack.c.bf16 %v599_v4, %v598_v2  ;;  %v1055_v9 = vpack.c.bf16 %v615_v5, %v614_v3 }
 0x11b   : > { %1068 = vst [vmem:[%s1343_s17 + $0x38] sm:$0xff] %v1020_v6   ;;  %1076 = vst [vmem:[%s1343_s17 + $0x78] sm:$0xff] %v1060_v7  }
 0x11c   : > { %1067 = vst [vmem:[%s1343_s17 + $0x30] sm:$0xff] %v1015_v8   ;;  %1075 = vst [vmem:[%s1343_s17 + $0x70] sm:$0xff] %v1055_v9  }
 0x11d PF: > { %s13_s14 = sadd.s32 1, %s1235_s14   ;;  %s1398_s12 = smov %s1231_s13 }
 0x11e   : > { %p10_p5 = scmp.ge.s32.totalorder %s13_s14, 4   ;;  %s1399_s13 = smov %s1401_s15 }
 0x120   :  { %12 = sbr.rel (!%p10_p5) target bundleno = 2 (0x2), region = 68 }

// kernel: bottleneck_block.4
= control target key start
LH: loop header
LB: loop body
LE: loop exit
PB: predicated region body
PF: predicated region fallthrough
CT: control target
= control target key end

     0   :  { %s3063_s12 = smov 0   ;;  %s3856_s0 = inlined_call_operand.vmem [shape: bf16[2,9,9,512], index: 0, kind: input, shape index: {}]   ;;  %s3857_s1 = inlined_call_operand.vmem [shape: bf16[2048,128], index: 1, kind: input, shape index: {}]   ;;  %s3858_s2 = inlined_call_operand.vmem [shape: f32[1,128], index: 2, kind: input, shape index: {}]   ;;  %s3859_s3 = inlined_call_operand.vmem [shape: bf16[2,64,128], index: 3, kind: output, shape index: {}]  }
   0x1 LB: > { %s2335_s13 = sadd.s32 4294967295, %s3041_s12   ;;  %p2339_p0 = scmp.ge.s32.totalorder %s3041_s12, 1  ;;  %s3041_s12 = sphi %s3063_s12, %s13_s12  }
   0x2   : > { %p137_p1 = scmp.lt.s32.totalorder %s3041_s12, 3 }
   0x4   : > { %p138_p2 = pnand %p2339_p0, %p137_p1 }
   0x5   : > { %v2907_v0 = vld [vmem:[%s3857_s1 + $0x40] sm:$0xff] (!%p138_p2)   ;;  %v2911_v4 = vld [vmem:[%s3857_s1 + $0x48] sm:$0xff] (!%p138_p2)   ;;  %v2915_v8 = vld [vmem:[%s3857_s1 + $0x50] sm:$0xff] (!%p138_p2)   ;;  %p161_p3 = scmp.lt.s32.totalorder (!%p138_p2), %s2335_s13, 1  ;;  %vm208_vm0 = vsmask.f32 (!%p138_p2), 3328 }
   0x6   : > { %141 = sbr.rel (%p138_p2) target bundleno = 391 (0x187), region = 32  ;;  %v2908_v1 = vld [vmem:[%s3857_s1 + $0xc0] sm:$0xff] (!%p138_p2)   ;;  %2578 = vmatprep.subr.bf16.mxu0 (!%p138_p2), %v2907_v0  ;;  %v2912_v5 = vld [vmem:[%s3857_s1 + $0xc8] sm:$0xff] (!%p138_p2)   ;;  %v2916_v9 = vld [vmem:[%s3857_s1 + $0xd0] sm:$0xff] (!%p138_p2)   ;;  %vm209_vm1 = vsmask.f32 (!%p138_p2), 7440 }
   0x7   : > { %v2909_v2 = vld [vmem:[%s3857_s1] sm:$0xff] (!%p138_p2)   ;;  %2618 = vmatprep.subr.bf16.mxu1 (!%p138_p2), %v2908_v1  ;;  %v2913_v6 = vld [vmem:[%s3857_s1 + $0x8] sm:$0xff] (!%p138_p2)   ;;  %v2917_v10 = vld [vmem:[%s3857_s1 + $0x10] sm:$0xff] (!%p138_p2)  }
   0x8   : > { %v2910_v3 = vld [vmem:[%s3857_s1 + $0x80] sm:$0xff] (!%p138_p2)   ;;  %2579 = vmatpush3.bf16.msra.mxu0 (!%p138_p2), %v2909_v2  ;;  %v2914_v7 = vld [vmem:[%s3857_s1 + $0x88] sm:$0xff] (!%p138_p2)   ;;  %v2918_v11 = vld [vmem:[%s3857_s1 + $0x90] sm:$0xff] (!%p138_p2)  }
   0x9   : > { %2619 = vmatpush3.bf16.msra.mxu1 (!%p138_p2), %v2910_v3  ;;  %2580 = vmatprep.subr.bf16.mxu0 (!%p138_p2), %v2911_v4  ;;  %v2919_v12 = vld [vmem:[%s3857_s1 + $0x58] sm:$0xff] (!%p138_p2)   ;;  %v2923_v16 = vld [vmem:[%s3857_s1 + $0x60] sm:$0xff] (!%p138_p2)   ;;  %v2927_v20 = vld [vmem:[%s3857_s1 + $0x68] sm:$0xff] (!%p138_p2)  }
   0xa   : > { %2620 = vmatprep.subr.bf16.mxu1 (!%p138_p2), %v2912_v5  ;;  %v2920_v13 = vld [vmem:[%s3857_s1 + $0xd8] sm:$0xff] (!%p138_p2)   ;;  %v2924_v17 = vld [vmem:[%s3857_s1 + $0xe0] sm:$0xff] (!%p138_p2)   ;;  %v2928_v21 = vld [vmem:[%s3857_s1 + $0xe8] sm:$0xff] (!%p138_p2)  }
   0xb   : > { %v2921_v14 = vld [vmem:[%s3857_s1 + $0x18] sm:$0xff] (!%p138_p2)   ;;  %v2925_v18 = vld [vmem:[%s3857_s1 + $0x20] sm:$0xff] (!%p138_p2)   ;;  %v2929_v22 = vld [vmem:[%s3857_s1 + $0x28] sm:$0xff] (!%p138_p2)  }
   0xc   : > { %2581 = vmatpush3.bf16.msra.mxu0 (!%p138_p2), %v2913_v6  ;;  %v2922_v15 = vld [vmem:[%s3857_s1 + $0x98] sm:$0xff] (!%p138_p2)   ;;  %v2926_v19 = vld [vmem:[%s3857_s1 + $0xa0] sm:$0xff] (!%p138_p2)   ;;  %v2930_v23 = vld [vmem:[%s3857_s1 + $0xa8] sm:$0xff] (!%p138_p2)  }
   0xd   : > { %2621 = vmatpush3.bf16.msra.mxu1 %v2914_v7  ;;  %2582 = vmatprep.subr.bf16.mxu0 %v2915_v8  ;;  %s3863_s13 = smov (!%p161_p3, %s2335_s13), 1  ;;  %v2931_v24 = vld [vmem:[%s3857_s1 + $0x70] sm:$0xff]   ;;  %v2935_v28 = vld [vmem:[%s3857_s1 + $0x78] sm:$0xff]   ;;  %v2939_v44 = vld [vmem:[%s3857_s1 + $0x140] sm:$0xff]  }
   0xe   : > { %2622 = vmatprep.subr.bf16.mxu1 %v2916_v9  ;;  %v2932_v25 = vld [vmem:[%s3857_s1 + $0xf0] sm:$0xff]   ;;  %s2898_s16 = smul.u32 288, %s3863_s13  ;;  %v2936_v29 = vld [vmem:[%s3857_s1 + $0xf8] sm:$0xff]   ;;  %v2940_v48 = vld [vmem:[%s3857_s1 + $0x1c0] sm:$0xff]   ;;  %s2546_s6 = sshll.u32 %s3863_s13, 5 }
   0xf   : > { %v2933_v26 = vld [vmem:[%s3857_s1 + $0x30] sm:$0xff]   ;;  %v2937_v30 = vld [vmem:[%s3857_s1 + $0x38] sm:$0xff]   ;;  %v2941_v50 = vld [vmem:[%s3857_s1 + $0x100] sm:$0xff]   ;;  %s3842_s9 = scalar_lea.vmem %s3859_s3, %s2546_s6 }
  0x10   : > { %2583 = vmatpush3.bf16.msra.mxu0 %v2917_v10  ;;  %v2934_v27 = vld [vmem:[%s3857_s1 + $0xb0] sm:$0xff]   ;;  %s3171_s27 = scalar_lea.vmem %s3856_s0, %s2898_s16  ;;  %v2938_v31 = vld [vmem:[%s3857_s1 + $0xb8] sm:$0xff]   ;;  %v2942_v51 = vld [vmem:[%s3857_s1 + $0x180] sm:$0xff]  }
  0x11   : > { %2623 = vmatpush3.bf16.msra.mxu1 %v2918_v11  ;;  %2584 = vmatprep.subr.bf16.mxu0 %v2919_v12  ;;  %v172_v32 = vld [vmem:[%s3171_s27] sm:$0xff]  ;;  %v173_v34 = vld [vmem:[%s3171_s27 + $0x8] sm:$0xff]  ;;  %v2947_v10 = vld [vmem:[%s3857_s1 + $0x150] sm:$0xff]  }
  0x12   : > { %2624 = vmatprep.subr.bf16.mxu1 %v2920_v13  ;;  %v3181_v33 = vld [vmem:[%s3171_s27 + $0x20] sm:$0xff]  ;;  %v212_v35 = vshrl.u32 %v172_v32, 16  ;;  %v215_v36 = vshll.u32 %v172_v32, 16  ;;  %v3186_v38 = vld [vmem:[%s3171_s27 + $0x28] sm:$0xff]  ;;  %v226_v39 = vshrl.u32 %v173_v34, 16  ;;  %v229_v40 = vshll.u32 %v173_v34, 16  ;;  %vm3412_vm2 = vmor %vm208_vm0, %vm209_vm1 }
  0x13   : > { %v2344_v37 = vcombine.high %v172_v32, %v3181_v33  ;;  %v2346_v41 = vcombine.high %v173_v34, %v3186_v38  ;;  %v2343_v42 = vcombine.low %v172_v32, %v3181_v33  ;;  %v2345_v43 = vcombine.low %v173_v34, %v3186_v38  ;;  %v2943_v53 = vld [vmem:[%s3857_s1 + $0x148] sm:$0xff]   ;;  %v3218_v62 = vld [vmem:[%s3171_s27 + $0x40] sm:$0xff]  ;;  %v2948_v13 = vld [vmem:[%s3857_s1 + $0x1d0] sm:$0xff]  }
  0x14   : > { %2585 = vmatpush3.bf16.msra.mxu0 %v2921_v14  ;;  %v214_v45 = vrot.slane %v212_v35, 4  ;;  %v217_v46 = vrot.slane %v215_v36, 5  ;;  %v228_v47 = vrot.slane %v226_v39, 4  ;;  %v231_v49 = vrot.slane %v229_v40, 5  ;;  %v2944_v57 = vld [vmem:[%s3857_s1 + $0x1c8] sm:$0xff]   ;;  %v3221_v63 = vld [vmem:[%s3171_s27 + $0x60] sm:$0xff] }
  0x15   : > { %2625 = vmatpush3.bf16.msra.mxu1 %v2922_v15  ;;  %2586 = vmatprep.subr.bf16.mxu0 %v2923_v16  ;;  %v240_v52 = vshrl.u32 %v3181_v33, 16  ;;  %v243_v55 = vshll.u32 %v3181_v33, 16  ;;  %v2945_v58 = vld [vmem:[%s3857_s1 + $0x108] sm:$0xff]   ;;  %v2348_v3 = vcombine.high %v3218_v62, %v3221_v63  ;;  %v2347_v5 = vcombine.low %v3218_v62, %v3221_v63 }
  0x16   : > { %2626 = vmatprep.subr.bf16.mxu1 %v2924_v17  ;;  %1744 = vmatprep.mubr.bf16.mxu0 %v2344_v37  ;;  %v218_v54 = vor.u32 %v217_v46, %v214_v45  ;;  %v232_v56 = vor.u32 %v231_v49, %v228_v47  ;;  %v2946_v60 = vld [vmem:[%s3857_s1 + $0x188] sm:$0xff]   ;;  %v254_v7 = vshrl.u32 %v3186_v38, 16  ;;  %v257_v11 = vshll.u32 %v3186_v38, 16  ;;  %v2955_v45 = vld [vmem:[%s3857_s1 + $0x160] sm:$0xff]  }
  0x17   : > { %1809 = vmatprep.mubr.bf16.mxu1 %v2346_v41  ;;  %v242_v59 = vrot.slane %v240_v52, 4  ;;  %v245_v61 = vrot.slane %v243_v55, 5  ;;  %v3224_v0 = vld [vmem:[%s3171_s27 + $0x48] sm:$0xff]  ;;  %v2376_v12 = vcombine.high %v3181_v33, %v3218_v62  ;;  %v2375_v16 = vcombine.low %v3181_v33, %v3218_v62 }
  0x18   : > { %2587 = vmatpush3.bf16.msra.mxu0 %v2925_v18  ;;  %v3226_v1 = vrot.slane %v218_v54, 4  ;;  %v3228_v2 = vrot.slane %v232_v56, 4  ;;  %v3233_v4 = vld [vmem:[%s3171_s27 + $0x68] sm:$0xff]  ;;  %v2378_v15 = vcombine.high %v3186_v38, %v3224_v0  ;;  %v2377_v17 = vcombine.low %v3186_v38, %v3224_v0  ;;  %v2949_v18 = vld [vmem:[%s3857_s1 + $0x110] sm:$0xff]   ;;  %v2958_v56 = vld [vmem:[%s3857_s1 + $0x1a0] sm:$0xff]  }
  0x19   : > { %2627 = vmatpush3.bf16.msra.mxu1 %v2926_v19  ;;  %2588 = vmatprep.subr.bf16.mxu0 %v2927_v20  ;;  %v246_v6 = vor.u32 %v245_v61, %v242_v59  ;;  %v2350_v8 = vcombine.high %v3224_v0, %v3233_v4  ;;  %v2349_v9 = vcombine.low %v3224_v0, %v3233_v4  ;;  %v256_v19 = vrot.slane %v254_v7, 4  ;;  %v2950_v20 = vld [vmem:[%s3857_s1 + $0x190] sm:$0xff]   ;;  %v3291_v37 = vld [vmem:[%s3171_s27 + $0x88] sm:$0xff]  ;;  %v3015_v38 = vld [vmem:[%s3857_s1 + $0x358] sm:$0xff]  }
  0x1a   : > { %2628 = vmatprep.subr.bf16.mxu1 %v2928_v21  ;;  %v259_v21 = vrot.slane %v257_v11, 5  ;;  %v296_v35 = vshrl.u32 %v3221_v63, 16  ;;  %v3294_v39 = vld [vmem:[%s3171_s27 + $0xa8] sm:$0xff]  ;;  %v299_v41 = vshll.u32 %v3221_v63, 16  ;;  %v2381_v55 = vcombine.low %v3233_v4, %v3291_v37  ;;  %v3347_v11 = vld [vmem:[%s3171_s27 + $0xe0] sm:$0xff] }
  0x1b   : > { %v3251_v14 = vrot.slane %v246_v6, 4  ;;  %v2959_v59 = vld [vmem:[%s3857_s1 + $0x168] sm:$0xff]  }
  0x1c   : > { %2589 = vmatpush3.bf16.msra.mxu0 %v2929_v22  ;;  %v2951_v22 = vld [vmem:[%s3857_s1 + $0x158] sm:$0xff]   ;;  %v298_v47 = vrot.slane %v296_v35, 4  ;;  %v301_v49 = vrot.slane %v299_v41, 5  ;;  %v2960_v61 = vld [vmem:[%s3857_s1 + $0x1e8] sm:$0xff]  }
  0x1d   : > { %2629 = vmatpush3.bf16.msra.mxu1 %v2930_v23  ;;  %2590 = vmatprep.subr.bf16.mxu0 %v2931_v24  ;;  %v268_v23 = vshrl.u32 %v3218_v62, 16  ;;  %v2952_v24 = vld [vmem:[%s3857_s1 + $0x1d8] sm:$0xff]   ;;  %v2962_v7 = vld [vmem:[%s3857_s1 + $0x1a8] sm:$0xff]  }
  0x1e   : > { %2630 = vmatprep.subr.bf16.mxu1 %v2932_v25  ;;  %v260_v25 = vor.u32 %v259_v21, %v256_v19  ;;  %v3010_v33 = vld [vmem:[%s3857_s1 + $0x388] sm:$0xff]  }
  0x20   : > { %2591 = vmatpush3.bf16.msra.mxu0 %v2933_v26  ;;  %v271_v26 = vshll.u32 %v3218_v62, 16  ;;  %v3285_v32 = vrot.slane %v260_v25, 4  ;;  %v3011_v62 = vld [vmem:[%s3857_s1 + $0x350] sm:$0xff]  }
  0x21   : > { %2631 = vmatpush3.bf16.msra.mxu1 %v2934_v27  ;;  %2592 = vmatprep.subr.bf16.mxu0 %v2935_v28  ;;  %v2953_v27 = vld [vmem:[%s3857_s1 + $0x118] sm:$0xff]   ;;  %v270_v28 = vrot.slane %v268_v23, 4 }
  0x22   : > { %2632 = vmatprep.subr.bf16.mxu1 %v2936_v29  ;;  %v2954_v29 = vld [vmem:[%s3857_s1 + $0x198] sm:$0xff]   ;;  %v273_v34 = vrot.slane %v271_v26, 5 }
  0x24   : > { %2593 = vmatpush3.bf16.msra.mxu0 %v2937_v30  ;;  %v3280_v30 = vld [vmem:[%s3171_s27 + $0x80] sm:$0xff]  ;;  %v274_v46 = vor.u32 %v273_v34, %v270_v28  ;;  %v2964_v28 = vld [vmem:[%s3857_s1 + $0x1f0] sm:$0xff]  }
  0x25   : > { %2633 = vmatpush3.bf16.msra.mxu1 %v2938_v31  ;;  %2658 = vmatprep.subr.bf16.mxu0 %v2939_v44  ;;  %v3283_v31 = vld [vmem:[%s3171_s27 + $0xa0] sm:$0xff]  ;;  %v2353_v44 = vcombine.low %v3291_v37, %v3294_v39  ;;  %v2379_v52 = vcombine.low %v3221_v63, %v3280_v30  ;;  %v327_v21 = vshll.u32 %v3280_v30, 16 }
  0x26   : > { %2698 = vmatprep.subr.bf16.mxu1 %v2940_v48  ;;  %v2352_v36 = vcombine.high %v3280_v30, %v3283_v31  ;;  %v2351_v40 = vcombine.low %v3280_v30, %v3283_v31  ;;  %v2956_v48 = vld [vmem:[%s3857_s1 + $0x1e0] sm:$0xff]   ;;  %v3319_v54 = vrot.slane %v274_v46, 4 }
  0x27   : > { %1745 = vmatmul.mubr.bf16.vlgmr.msra.gmra.mrb[0].mxu0 %v2343_v42  ;;  %v282_v42 = vshrl.u32 %v3224_v0, 16 }
  0x28   : > { %1810 = vmatmul.mubr.bf16.vlgmr.msra.gmra.mrb[0].mxu1 %v2345_v43  ;;  %2659 = vmatpush3.bf16.msra.mxu0 %v2941_v50  ;;  %v2354_v43 = vcombine.high %v3291_v37, %v3294_v39  ;;  %v2380_v50 = vcombine.high %v3221_v63, %v3280_v30  ;;  %v3018_v63 = vld [vmem:[%s3857_s1 + $0x398] sm:$0xff]  }
  0x29   : > { %2699 = vmatpush3.bf16.msra.mxu1 %v2942_v51  ;;  %2660 = vmatprep.subr.bf16.mxu0 %v2943_v53  ;;  %v2382_v51 = vcombine.high %v3233_v4, %v3291_v37  ;;  %v2957_v53 = vld [vmem:[%s3857_s1 + $0x120] sm:$0xff]  }
  0x2a   : > { %2700 = vmatprep.subr.bf16.mxu1 %v2944_v57  ;;  %1752 = vmatprep.mubr.bf16.mxu0 %v2348_v3  ;;  %v302_v57 = vor.u32 %v301_v49, %v298_v47  ;;  %v2968_v47 = vld [vmem:[%s3857_s1 + $0x1f8] sm:$0xff]   ;;  %v329_v49 = vrot.slane %v327_v21, 5 }
  0x2b   : > { %1817 = vmatprep.mubr.bf16.mxu1 %v2350_v8  ;;  %v3342_v8 = vld [vmem:[%s3171_s27 + $0xc0] sm:$0xff] }
  0x2c   : > { %2661 = vmatpush3.bf16.msra.mxu0 %v2945_v58  ;;  %v284_v58 = vrot.slane %v282_v42, 4  ;;  %v3333_v3 = vrot.slane %v302_v57, 4  ;;  %v2356_v23 = vcombine.high %v3342_v8, %v3347_v11  ;;  %v2355_v25 = vcombine.low %v3342_v8, %v3347_v11  ;;  %v2970_v57 = vld [vmem:[%s3857_s1 + $0x1b8] sm:$0xff]  }
  0x2d   : > { %2701 = vmatpush3.bf16.msra.mxu1 %v2946_v60  ;;  %2662 = vmatprep.subr.bf16.mxu0 %v2947_v10  ;;  %v285_v60 = vshll.u32 %v3224_v0, 16  ;;  %v313_v10 = vshll.u32 %v3233_v4, 16  ;;  %v2384_v34 = vcombine.high %v3283_v31, %v3342_v8  ;;  %v3014_v0 = vld [vmem:[%s3857_s1 + $0x390] sm:$0xff]  }
  0x2e   : > { %2702 = vmatprep.subr.bf16.mxu1 %v2948_v13  ;;  %v3350_v13 = vld [vmem:[%s3171_s27 + $0xc8] sm:$0xff] }
  0x2f   : > { %1753 = vmatmul.mubr.bf16.gmra.mrb[4].mxu0 %v2347_v5  ;;  %v2961_v5 = vld [vmem:[%s3857_s1 + $0x128] sm:$0xff]   ;;  %v287_v6 = vrot.slane %v285_v60, 5  ;;  %v2386_v35 = vcombine.high %v3294_v39, %v3350_v13  ;;  %v2385_v42 = vcombine.low %v3294_v39, %v3350_v13  ;;  %v178_v60 = vld [vmem:[%s3171_s27 + $0x30] sm:$0x11] }
  0x30   : > { %1818 = vmatmul.mubr.bf16.gmra.mrb[4].mxu1 %v2349_v9  ;;  %2663 = vmatpush3.bf16.msra.mxu0 %v2949_v18  ;;  %v310_v9 = vshrl.u32 %v3233_v4, 16  ;;  %v3353_v18 = vld [vmem:[%s3171_s27 + $0xe8] sm:$0xff] }
  0x31   : > { %2703 = vmatpush3.bf16.msra.mxu1 %v2950_v20  ;;  %2664 = vmatprep.subr.bf16.mxu0 %v2951_v22  ;;  %v288_v19 = vor.u32 %v287_v6, %v284_v58  ;;  %v324_v20 = vshrl.u32 %v3280_v30, 16  ;;  %v352_v22 = vshrl.u32 %v3283_v31, 16  ;;  %v2357_v26 = vcombine.low %v3350_v13, %v3353_v18  ;;  %v3019_v30 = vld [vmem:[%s3857_s1 + $0x360] sm:$0xff]   ;;  %v3023_v4 = vld [vmem:[%s3857_s1 + $0x368] sm:$0xff]  }
  0x32   : > { %2704 = vmatprep.subr.bf16.mxu1 %v2952_v24  ;;  %1760 = vmatprep.mubr.bf16.mxu0 %v2352_v36  ;;  %v2358_v24 = vcombine.high %v3350_v13, %v3353_v18  ;;  %v2383_v36 = vcombine.low %v3283_v31, %v3342_v8  ;;  %v312_v41 = vrot.slane %v310_v9, 4  ;;  %v175_v9 = vld [vmem:[%s3171_s27 + $0x18] sm:$0x11] }
  0x33   : > { %1825 = vmatprep.mubr.bf16.mxu1 %v2354_v43  ;;  %v2966_v43 = vld [vmem:[%s3857_s1 + $0x1b0] sm:$0xff]   ;;  %v326_v46 = vrot.slane %v324_v20, 4  ;;  %v235_v21 = vshll.u32 %v175_v9, 16  ;;  %v2407_v20 = vld [vmem:[%s3858_s2] ss:$0 sm:$0xff] }
  0x34   : > { %2665 = vmatpush3.bf16.msra.mxu0 %v2953_v27  ;;  %v2963_v27 = vld [vmem:[%s3857_s1 + $0x170] sm:$0xff]  }
  0x35   : > { %2705 = vmatpush3.bf16.msra.mxu1 %v2954_v29  ;;  %2666 = vmatprep.subr.bf16.mxu0 %v2955_v45  ;;  %v3372_v29 = vrot.slane %v288_v19, 4  ;;  %v2967_v45 = vld [vmem:[%s3857_s1 + $0x178] sm:$0xff]   ;;  %v330_v19 = vor.u32 %v329_v49, %v326_v46 }
  0x36   : > { %2706 = vmatprep.subr.bf16.mxu1 %v2956_v48 }
  0x37   : > { %1761 = vmatmul.mubr.bf16.gmra.mrb[8].mxu0 %v2351_v40  ;;  %v2965_v40 = vld [vmem:[%s3857_s1 + $0x130] sm:$0xff]  }
  0x38   : > { %1826 = vmatmul.mubr.bf16.gmra.mrb[8].mxu1 %v2353_v44  ;;  %2667 = vmatpush3.bf16.msra.mxu0 %v2957_v53  ;;  %v315_v44 = vrot.slane %v313_v10, 5  ;;  %v2969_v53 = vld [vmem:[%s3857_s1 + $0x138] sm:$0xff]  }
  0x39   : > { %2707 = vmatpush3.bf16.msra.mxu1 %v2958_v56  ;;  %2668 = vmatprep.subr.bf16.mxu0 %v2959_v59  ;;  %v3397_v56 = vrot.slane %v352_v22, 4  ;;  %v174_v59 = vld [vmem:[%s3171_s27 + $0x10] sm:$0x11]  ;;  %v179_v10 = vld [vmem:[%s3171_s27 + $0x38] sm:$0x11] }
  0x3a   : > { %2708 = vmatprep.subr.bf16.mxu1 %v2960_v61  ;;  %1768 = vmatprep.mubr.bf16.mxu0 %v2356_v23  ;;  %v316_v48 = vor.u32 %v315_v44, %v312_v41  ;;  %v355_v61 = vshll.u32 %v3283_v31, 16  ;;  %v221_v6 = vshll.u32 %v174_v59, 16  ;;  %v263_v22 = vshll.u32 %v179_v10, 16  ;;  %v2977_v59 = vld [vmem:[%s3857_s1 + $0x208] sm:$0xff]   ;;  %v183_v10 = vld [vmem:[%s3171_s27 + $0x58] sm:$0x11] }
  0x3b   : > { %1833 = vmatprep.mubr.bf16.mxu1 %v2358_v24  ;;  %v3433_v44 = vrot.slane %v330_v19, 4  ;;  %v2979_v19 = vld [vmem:[%s3857_s1 + $0x250] sm:$0xff]   ;;  %v3024_v31 = vld [vmem:[%s3857_s1 + $0x3e8] sm:$0xff]  }
  0x3c   : > { %2669 = vmatpush3.bf16.msra.mxu0 %v2961_v5  ;;  %v3402_v58 = vrot.slane %v316_v48, 4  ;;  %v338_v5 = vshrl.u32 %v3291_v37, 16  ;;  %v223_v23 = vrot.slane %v221_v6, 5  ;;  %v182_v6 = vld [vmem:[%s3171_s27 + $0x50] sm:$0x11] }
  0x3d   : > { %2709 = vmatpush3.bf16.msra.mxu1 %v2962_v7  ;;  %2670 = vmatprep.subr.bf16.mxu0 %v2963_v27  ;;  %v249_v7 = vshll.u32 %v178_v60, 16  ;;  %v237_v27 = vrot.slane %v235_v21, 5  ;;  %v341_v60 = vshll.u32 %v3291_v37, 16  ;;  %v277_v9 = vshll.u32 %v182_v6, 16  ;;  %v204_v37 = vld [vmem:[%s3171_s27 + $0x100] sm:$0xff] }
  0x3e   : > { %2710 = vmatprep.subr.bf16.mxu1 %v2964_v28  ;;  %v265_v28 = vrot.slane %v263_v22, 5  ;;  %v187_v22 = vld [vmem:[%s3171_s27 + $0x78] sm:$0x11] }
  0x3f   : > { %1769 = vmatmul.mubr.bf16.gmra.mrb[12].mxu0 %v2355_v25  ;;  %v251_v24 = vrot.slane %v249_v7, 5  ;;  %v2971_v25 = vld [vmem:[%s3857_s1 + $0x240] sm:$0xff]   ;;  %v366_v7 = vshrl.u32 %v3294_v39, 16 }
  0x40   : > { %1834 = vmatmul.mubr.bf16.gmra.mrb[12].mxu1 %v2357_v26  ;;  %2671 = vmatpush3.bf16.msra.mxu0 %v2965_v40  ;;  %v2972_v26 = vld [vmem:[%s3857_s1 + $0x2c0] sm:$0xff]   ;;  %v224_v40 = vsel %vm3412_vm2, %v3226_v1, %v223_v23  ;;  %v238_v1 = vsel %vm3412_vm2, %v3228_v2, %v237_v27  ;;  %v357_v2 = vrot.slane %v355_v61, 5  ;;  %v2978_v61 = vld [vmem:[%s3857_s1 + $0x288] sm:$0xff]   ;;  %v291_v23 = vshll.u32 %v183_v10, 16  ;;  %v190_v10 = vld [vmem:[%s3171_s27 + $0x90] sm:$0x11] }
  0x41   : > { %2711 = vmatpush3.bf16.msra.mxu1 %v2966_v43  ;;  %2672 = vmatprep.subr.bf16.mxu0 %v2967_v45  ;;  %v3428_v41 = vsel %vm3412_vm2, %v3251_v14, %v251_v24  ;;  %v2973_v43 = vld [vmem:[%s3857_s1 + $0x200] sm:$0xff]   ;;  %v3443_v14 = vsel %vm3412_vm2, %v3285_v32, %v265_v28  ;;  %v2976_v32 = vld [vmem:[%s3857_s1 + $0x2c8] sm:$0xff]   ;;  %v279_v24 = vrot.slane %v277_v9, 5  ;;  %v368_v6 = vrot.slane %v366_v7, 4  ;;  %v2986_v9 = vld [vmem:[%s3857_s1 + $0x298] sm:$0xff]  }
  0x42   : > { %2712 = vmatprep.subr.bf16.mxu1 %v2968_v47  ;;  %v2359_v45 = vcombine.low %v224_v40, %v3428_v41  ;;  %v2360_v46 = vcombine.high %v224_v40, %v3428_v41  ;;  %v2974_v47 = vld [vmem:[%s3857_s1 + $0x280] sm:$0xff]   ;;  %v2361_v48 = vcombine.low %v238_v1, %v3443_v14  ;;  %v2362_v49 = vcombine.high %v238_v1, %v3443_v14  ;;  %v2980_v40 = vld [vmem:[%s3857_s1 + $0x2d0] sm:$0xff]   ;;  %v191_v7 = vld [vmem:[%s3171_s27 + $0x98] sm:$0x11] }
  0x43   : > { %v293_v28 = vrot.slane %v291_v23, 5  ;;  %v2987_v23 = vld [vmem:[%s3857_s1 + $0x260] sm:$0xff]  }
  0x44   : > { %2673 = vmatpush3.bf16.msra.mxu0 %v2969_v53  ;;  %v2975_v53 = vld [vmem:[%s3857_s1 + $0x248] sm:$0xff]   ;;  %1874 = vmatprep.mubr.bf16.mxu0 %v2360_v46 }
  0x45   : > { %2713 = vmatpush3.bf16.msra.mxu1 %v2970_v57  ;;  %2738 = vmatprep.subr.bf16.mxu0 %v2971_v25  ;;  %v3456_v57 = vrot.slane %v338_v5, 4  ;;  %v186_v5 = vld [vmem:[%s3171_s27 + $0x70] sm:$0x11]  ;;  %v319_v25 = vshll.u32 %v187_v22, 16  ;;  %v333_v22 = vshll.u32 %v190_v10, 16  ;;  %v2991_v10 = vld [vmem:[%s3857_s1 + $0x268] sm:$0xff]  }
  0x46   : > { %2778 = vmatprep.subr.bf16.mxu1 %v2972_v26  ;;  %1939 = vmatprep.mubr.bf16.mxu1 %v2362_v49  ;;  %v305_v21 = vshll.u32 %v186_v5, 16  ;;  %v358_v26 = vor.u32 %v357_v2, %v3397_v56  ;;  %v2982_v56 = vld [vmem:[%s3857_s1 + $0x290] sm:$0xff]  }
  0x47   : > { %1875 = vmatmul.mubr.bf16.vlgmr.msra.gmra.mrb[16].mxu0 %v2359_v45  ;;  %v3483_v45 = vsel %vm3412_vm2, %v3319_v54, %v279_v24  ;;  %v321_v46 = vrot.slane %v319_v25, 5  ;;  %v195_v25 = vld [vmem:[%s3171_s27 + $0xb8] sm:$0x11] }
  0x48   : > { %1940 = vmatmul.mubr.bf16.vlgmr.msra.gmra.mrb[16].mxu1 %v2361_v48  ;;  %2739 = vmatpush3.bf16.msra.mxu0 %v2973_v43  ;;  %v307_v27 = vrot.slane %v305_v21, 5  ;;  %v2981_v43 = vld [vmem:[%s3857_s1 + $0x210] sm:$0xff]   ;;  %v2391_v54 = vcombine.low %v3428_v41, %v3483_v45 }
  0x49   : > { %2779 = vmatpush3.bf16.msra.mxu1 %v2974_v47  ;;  %2740 = vmatprep.subr.bf16.mxu0 %v2975_v53  ;;  %v3496_v47 = vsel %vm3412_vm2, %v3372_v29, %v293_v28  ;;  %v3505_v49 = vsel %vm3412_vm2, %v3402_v58, %v321_v46  ;;  %v2983_v29 = vld [vmem:[%s3857_s1 + $0x258] sm:$0xff]   ;;  %v359_v53 = vrot.slane %v358_v26, 4  ;;  %v194_v21 = vld [vmem:[%s3171_s27 + $0xb0] sm:$0x11] }
  0x4a   : > { %2780 = vmatprep.subr.bf16.mxu1 %v2976_v32  ;;  %v3491_v1 = vsel %vm3412_vm2, %v3333_v3, %v307_v27  ;;  %v2366_v2 = vcombine.high %v3496_v47, %v3505_v49  ;;  %v2365_v32 = vcombine.low %v3496_v47, %v3505_v49  ;;  %v2984_v58 = vld [vmem:[%s3857_s1 + $0x2d8] sm:$0xff]   ;;  %v2393_v5 = vcombine.low %v3443_v14, %v3496_v47 }
  0x4b   : > { %v2364_v48 = vcombine.high %v3483_v45, %v3491_v1  ;;  %v2363_v3 = vcombine.low %v3483_v45, %v3491_v1  ;;  %v361_v24 = vshll.u32 %v194_v21, 16  ;;  %v347_v27 = vshll.u32 %v191_v7, 16  ;;  %v2992_v7 = vld [vmem:[%s3857_s1 + $0x2e8] sm:$0xff]  }
  0x4c   : > { %2741 = vmatpush3.bf16.msra.mxu0 %v2977_v59  ;;  %v343_v59 = vrot.slane %v341_v60, 5  ;;  %1947 = vmatprep.mubr.bf16.mxu1 %v2366_v2 }
  0x4d   : > { %2781 = vmatpush3.bf16.msra.mxu1 %v2978_v61  ;;  %2742 = vmatprep.subr.bf16.mxu0 %v2979_v19  ;;  %v2985_v61 = vld [vmem:[%s3857_s1 + $0x218] sm:$0xff]   ;;  %v369_v19 = vshll.u32 %v3294_v39, 16  ;;  %v349_v46 = vrot.slane %v347_v27, 5  ;;  %v198_v27 = vld [vmem:[%s3171_s27 + $0xd0] sm:$0x11]  ;;  %v2392_v39 = vcombine.high %v3428_v41, %v3483_v45 }
  0x4e   : > { %2782 = vmatprep.subr.bf16.mxu1 %v2980_v40  ;;  %1882 = vmatprep.mubr.bf16.mxu0 %v2364_v48  ;;  %v344_v60 = vor.u32 %v343_v59, %v3456_v57  ;;  %v335_v57 = vrot.slane %v333_v22, 5  ;;  %v375_v40 = vshll.u32 %v195_v25, 16  ;;  %v2989_v59 = vld [vmem:[%s3857_s1 + $0x220] sm:$0xff]  }
  0x4f   : > { %1883 = vmatmul.mubr.bf16.gmra.mrb[20].mxu0 %v2363_v3  ;;  %v371_v28 = vrot.slane %v369_v19, 5 }
  0x50   : > { %2743 = vmatpush3.bf16.msra.mxu0 %v2981_v43  ;;  %1948 = vmatmul.mubr.bf16.gmra.mrb[20].mxu1 %v2365_v32  ;;  %v345_v26 = vrot.slane %v344_v60, 4  ;;  %v363_v43 = vrot.slane %v361_v24, 5  ;;  %v3539_v48 = vsel %vm3412_vm2, %v3433_v44, %v335_v57  ;;  %v377_v3 = vrot.slane %v375_v40, 5  ;;  %v2993_v24 = vld [vmem:[%s3857_s1 + $0x228] sm:$0xff]  }
  0x51   : > { %2783 = vmatpush3.bf16.msra.mxu1 %v2982_v56  ;;  %2744 = vmatprep.subr.bf16.mxu0 %v2983_v29  ;;  %v372_v56 = vor.u32 %v371_v28, %v368_v6  ;;  %v2988_v29 = vld [vmem:[%s3857_s1 + $0x2e0] sm:$0xff]   ;;  %v380_v6 = vshrl.u32 %v3342_v8, 16  ;;  %v383_v60 = vshll.u32 %v3342_v8, 16  ;;  %v202_v28 = vld [vmem:[%s3171_s27 + $0xf0] sm:$0x11]  ;;  %v408_v57 = vshrl.u32 %v3347_v11, 16 }
  0x52   : > { %2784 = vmatprep.subr.bf16.mxu1 %v2984_v58  ;;  %v3546_v2 = vsel %vm3412_vm2, %v359_v53, %v363_v43  ;;  %v3550_v32 = vsel %vm3412_vm2, %v345_v26, %v349_v46  ;;  %v2990_v53 = vld [vmem:[%s3857_s1 + $0x2a0] sm:$0xff]   ;;  %v2994_v26 = vld [vmem:[%s3857_s1 + $0x2a8] sm:$0xff]   ;;  %v389_v43 = vshll.u32 %v198_v27, 16  ;;  %v411_v46 = vshll.u32 %v3347_v11, 16 }
  0x53   : > { %v373_v58 = vrot.slane %v372_v56, 4  ;;  %v2368_v44 = vcombine.high %v3539_v48, %v3546_v2  ;;  %v2397_v19 = vcombine.low %v3505_v49, %v3550_v32  ;;  %v385_v25 = vrot.slane %v383_v60, 5 }
  0x54   : > { %2745 = vmatpush3.bf16.msra.mxu0 %v2985_v61  ;;  %v2367_v61 = vcombine.low %v3539_v48, %v3546_v2  ;;  %v417_v56 = vshll.u32 %v202_v28, 16 }
  0x55   : > { %2785 = vmatpush3.bf16.msra.mxu1 %v2986_v9  ;;  %2746 = vmatprep.subr.bf16.mxu0 %v2987_v23  ;;  %v3565_v9 = vsel %vm3412_vm2, %v373_v58, %v377_v3  ;;  %v382_v23 = vrot.slane %v380_v6, 4  ;;  %v199_v3 = vld [vmem:[%s3171_s27 + $0xd8] sm:$0x11]  ;;  %v410_v58 = vrot.slane %v408_v57, 4  ;;  %v391_v6 = vrot.slane %v389_v43, 5  ;;  %v2996_v57 = vld [vmem:[%s3857_s1 + $0x2f0] sm:$0xff]  }
  0x56   : > { %2786 = vmatprep.subr.bf16.mxu1 %v2988_v29  ;;  %1890 = vmatprep.mubr.bf16.mxu0 %v2368_v44  ;;  %v2370_v21 = vcombine.high %v3550_v32, %v3565_v9  ;;  %v2369_v22 = vcombine.low %v3550_v32, %v3565_v9  ;;  %v2995_v29 = vld [vmem:[%s3857_s1 + $0x270] sm:$0xff]   ;;  %v394_v44 = vshrl.u32 %v3350_v13, 16  ;;  %v403_v60 = vshll.u32 %v199_v3, 16 }
  0x57   : > { %1891 = vmatmul.mubr.bf16.gmra.mrb[24].mxu0 %v2367_v61  ;;  %v386_v40 = vor.u32 %v385_v25, %v382_v23  ;;  %v397_v61 = vshll.u32 %v3350_v13, 16  ;;  %v422_v23 = vshrl.u32 %v3353_v18, 16  ;;  %v425_v25 = vshll.u32 %v3353_v18, 16  ;;  %v2997_v3 = vld [vmem:[%s3857_s1 + $0x230] sm:$0xff]  }
  0x58   : > { %2747 = vmatpush3.bf16.msra.mxu0 %v2989_v59  ;;  %1955 = vmatprep.mubr.bf16.mxu1 %v2370_v21  ;;  %v203_v59 = vld [vmem:[%s3171_s27 + $0xf8] sm:$0x11]  ;;  %v419_v21 = vrot.slane %v417_v56, 5  ;;  %v3030_v13 = vld [vmem:[%s3857_s1 + $0x3b0] sm:$0xff]  }
  0x59   : > { %2787 = vmatpush3.bf16.msra.mxu1 %v2990_v53  ;;  %2748 = vmatprep.subr.bf16.mxu0 %v2991_v10  ;;  %v387_v53 = vrot.slane %v386_v40, 4  ;;  %v413_v10 = vrot.slane %v411_v46, 5  ;;  %v424_v28 = vrot.slane %v422_v23, 4  ;;  %v405_v46 = vrot.slane %v403_v60, 5  ;;  %v3000_v60 = vld [vmem:[%s3857_s1 + $0x2f8] sm:$0xff]  }
  0x5a   : > { %2788 = vmatprep.subr.bf16.mxu1 %v2992_v7  ;;  %1956 = vmatmul.mubr.bf16.gmra.mrb[24].mxu1 %v2369_v22  ;;  %v396_v22 = vrot.slane %v394_v44, 4  ;;  %v399_v7 = vrot.slane %v397_v61, 5  ;;  %v427_v56 = vrot.slane %v425_v25, 5  ;;  %v3002_v23 = vld [vmem:[%s3857_s1 + $0x2b8] sm:$0xff]   ;;  %v3003_v25 = vld [vmem:[%s3857_s1 + $0x340] sm:$0xff]  }
  0x5b   : > { %v3604_v40 = vsel %vm3412_vm2, %v387_v53, %v391_v6  ;;  %v2999_v53 = vld [vmem:[%s3857_s1 + $0x278] sm:$0xff]  }
  0x5c   : > { %2749 = vmatpush3.bf16.msra.mxu0 %v2993_v24  ;;  %v414_v24 = vor.u32 %v413_v10, %v410_v58  ;;  %v400_v27 = vor.u32 %v399_v7, %v396_v22  ;;  %v2998_v58 = vld [vmem:[%s3857_s1 + $0x2b0] sm:$0xff]   ;;  %v428_v44 = vor.u32 %v427_v56, %v424_v28  ;;  %v3001_v7 = vld [vmem:[%s3857_s1 + $0x238] sm:$0xff]   ;;  %v3004_v28 = vld [vmem:[%s3857_s1 + $0x3c0] sm:$0xff]   ;;  %v2400_v41 = vcombine.high %v3546_v2, %v3604_v40 }
  0x5d   : > { %2789 = vmatpush3.bf16.msra.mxu1 %v2994_v26  ;;  %2750 = vmatprep.subr.bf16.mxu0 %v2995_v29  ;;  %v431_v26 = vshll.u32 %v203_v59, 16  ;;  %v3021_v56 = vld [vmem:[%s3857_s1 + $0x320] sm:$0xff]  }
  0x5e   : > { %v415_v43 = vrot.slane %v414_v24, 4  ;;  %v401_v29 = vrot.slane %v400_v27, 4  ;;  %2790 = vmatprep.subr.bf16.mxu1 %v2996_v57  ;;  %v429_v22 = vrot.slane %v428_v44, 4  ;;  %v3005_v57 = vld [vmem:[%s3857_s1 + $0x300] sm:$0xff]   ;;  %v3028_v44 = vld [vmem:[%s3857_s1 + $0x3f0] sm:$0xff]  }
  0x5f   : > { %v433_v61 = vrot.slane %v431_v26, 5 }
  0x60   : > { %v3614_v59 = vsel %vm3412_vm2, %v415_v43, %v419_v21  ;;  %2751 = vmatpush3.bf16.msra.mxu0 %v2997_v3  ;;  %v3628_v21 = vsel %vm3412_vm2, %v401_v29, %v405_v46  ;;  %v3007_v43 = vld [vmem:[%s3857_s1 + $0x348] sm:$0xff]   ;;  %v3027_v29 = vld [vmem:[%s3857_s1 + $0x370] sm:$0xff]  }
  0x61   : > { %v2372_v6 = vcombine.high %v3604_v40, %v3614_v59  ;;  %v2371_v10 = vcombine.low %v3604_v40, %v3614_v59  ;;  %2791 = vmatpush3.bf16.msra.mxu1 %v2998_v58  ;;  %2752 = vmatprep.subr.bf16.mxu0 %v2999_v53  ;;  %v3638_v24 = vsel %vm3412_vm2, %v429_v22, %v433_v61  ;;  %v3008_v46 = vld [vmem:[%s3857_s1 + $0x3c8] sm:$0xff]   ;;  %v3029_v61 = vld [vmem:[%s3857_s1 + $0x330] sm:$0xff]   ;;  %v3031_v53 = vld [vmem:[%s3857_s1 + $0x378] sm:$0xff]  }
  0x62   : > { %2792 = vmatprep.subr.bf16.mxu1 %v3000_v60  ;;  %v2374_v26 = vcombine.high %v3628_v21, %v3638_v24  ;;  %v2373_v27 = vcombine.low %v3628_v21, %v3638_v24  ;;  %v205_v3 = vld [vmem:[%s3171_s27 + $0x108] sm:$0xff]  ;;  %v2387_v58 = vcombine.low %v3347_v11, %v204_v37  ;;  %v3032_v60 = vld [vmem:[%s3857_s1 + $0x3f8] sm:$0xff]  }
  0x63   : > { %1898 = vmatprep.mubr.bf16.mxu0 %v2372_v6  ;;  %v2390_v8 = vcombine.high %v3353_v18, %v205_v3  ;;  %v436_v6 = vshrl.u32 %v204_v37, 16  ;;  %v3034_v22 = vld [vmem:[%s3857_s1 + $0x3b8] sm:$0xff]  }
  0x64   : > { %1899 = vmatmul.mubr.bf16.gmra.mrb[28].mxu0 %v2371_v10  ;;  %1963 = vmatprep.mubr.bf16.mxu1 %v2374_v26  ;;  %v439_v10 = vshll.u32 %v204_v37, 16 }
  0x65   : > { %2753 = vmatpush3.bf16.msra.mxu0 %v3001_v7  ;;  %2793 = vmatpush3.bf16.msra.mxu1 %v3002_v23  ;;  %v2396_v7 = vcombine.high %v3491_v1, %v3539_v48  ;;  %v450_v23 = vshrl.u32 %v205_v3, 16  ;;  %v438_v26 = vrot.slane %v436_v6, 4 }
  0x66   : > { %2004 = vmatprep.mubr.bf16.mxu0 %v2376_v12  ;;  %2818 = vmatprep.subr.bf16.mxu0 %v3003_v25  ;;  %v3006_v12 = vld [vmem:[%s3857_s1 + $0x380] sm:$0xff]   ;;  %v453_v25 = vshll.u32 %v205_v3, 16 }
  0x67   : > { %2858 = vmatprep.subr.bf16.mxu1 %v3004_v28  ;;  %1964 = vmatmul.mubr.bf16.gmra.mrb[28].mxu1 %v2373_v27  ;;  %v441_v27 = vrot.slane %v439_v10, 5  ;;  %v206_v28 = vld [vmem:[%s3171_s27 + $0x110] sm:$0x11] }
  0x68   : > { %2069 = vmatprep.mubr.bf16.mxu1 %v2378_v15  ;;  %v3009_v15 = vld [vmem:[%s3857_s1 + $0x308] sm:$0xff]  }
  0x6c   : > { %2005 = vmatmul.mubr.bf16.vlgmr.msra.gmra.mrb[32].mxu0 %v2375_v16  ;;  %v3012_v16 = vld [vmem:[%s3857_s1 + $0x3d0] sm:$0xff]  }
  0x6d   : > { %2819 = vmatpush3.bf16.msra.mxu0 %v3005_v57  ;;  %2012 = vmatprep.mubr.bf16.mxu0 %v2380_v50  ;;  %v3013_v50 = vld [vmem:[%s3857_s1 + $0x310] sm:$0xff]   ;;  %v2398_v57 = vcombine.high %v3505_v49, %v3550_v32 }
  0x6e   : > { %2820 = vmatprep.subr.bf16.mxu0 %v3007_v43  ;;  %v442_v43 = vor.u32 %v441_v27, %v438_v26 }
  0x6f   : > { %2070 = vmatmul.mubr.bf16.vlgmr.msra.gmra.mrb[32].mxu1 %v2377_v17  ;;  %v3017_v17 = vld [vmem:[%s3857_s1 + $0x318] sm:$0xff]  }
  0x70   : > { %2859 = vmatpush3.bf16.msra.mxu1 %v3006_v12  ;;  %2077 = vmatprep.mubr.bf16.mxu1 %v2382_v51  ;;  %v3016_v51 = vld [vmem:[%s3857_s1 + $0x3d8] sm:$0xff]   ;;  %v445_v12 = vshll.u32 %v206_v28, 16  ;;  %v443_v45 = vrot.slane %v442_v43, 4 }
  0x71   : > { %2821 = vmatpush3.bf16.msra.mxu0 %v3009_v15  ;;  %2860 = vmatprep.subr.bf16.mxu1 %v3008_v46  ;;  %v452_v15 = vrot.slane %v450_v23, 4  ;;  %v455_v46 = vrot.slane %v453_v25, 5 }
  0x72   : > { %2822 = vmatprep.subr.bf16.mxu0 %v3011_v62  ;;  %v2395_v62 = vcombine.low %v3491_v1, %v3539_v48  ;;  %v2399_v1 = vcombine.low %v3546_v2, %v3604_v40 }
  0x74   : > { %2013 = vmatmul.mubr.bf16.gmra.mrb[36].mxu0 %v2379_v52  ;;  %2861 = vmatpush3.bf16.msra.mxu1 %v3010_v33  ;;  %v3020_v52 = vld [vmem:[%s3857_s1 + $0x3e0] sm:$0xff]   ;;  %v207_v33 = vld [vmem:[%s3171_s27 + $0x118] sm:$0x11] }
  0x75   : > { %2823 = vmatpush3.bf16.msra.mxu0 %v3013_v50  ;;  %2862 = vmatprep.subr.bf16.mxu1 %v3012_v16  ;;  %v456_v16 = vor.u32 %v455_v46, %v452_v15  ;;  %v459_v50 = vshll.u32 %v207_v33, 16 }
  0x76   : > { %2824 = vmatprep.subr.bf16.mxu0 %v3015_v38  ;;  %2020 = vmatprep.mubr.bf16.mxu0 %v2384_v34  ;;  %v2388_v34 = vcombine.high %v3347_v11, %v204_v37  ;;  %v2389_v11 = vcombine.low %v3353_v18, %v205_v3  ;;  %v2394_v18 = vcombine.high %v3443_v14, %v3496_v47 }
  0x77   : > { %2078 = vmatmul.mubr.bf16.gmra.mrb[36].mxu1 %v2381_v55  ;;  %v3022_v55 = vld [vmem:[%s3857_s1 + $0x3a0] sm:$0xff]   ;;  %v2402_v38 = vcombine.high %v3565_v9, %v3628_v21  ;;  %v457_v47 = vrot.slane %v456_v16, 4 }
  0x78   : > { %2863 = vmatpush3.bf16.msra.mxu1 %v3014_v0  ;;  %2085 = vmatprep.mubr.bf16.mxu1 %v2386_v35  ;;  %v3025_v35 = vld [vmem:[%s3857_s1 + $0x328] sm:$0xff]  }
  0x79   : > { %2825 = vmatpush3.bf16.msra.mxu0 %v3017_v17  ;;  %2864 = vmatprep.subr.bf16.mxu1 %v3016_v51  ;;  %v2401_v17 = vcombine.low %v3565_v9, %v3628_v21 }
  0x7a   : > { %2826 = vmatprep.subr.bf16.mxu0 %v3019_v30 }
  0x7c   : > { %2021 = vmatmul.mubr.bf16.gmra.mrb[40].mxu0 %v2383_v36  ;;  %2865 = vmatpush3.bf16.msra.mxu1 %v3018_v63  ;;  %v3026_v36 = vld [vmem:[%s3857_s1 + $0x3a8] sm:$0xff]  }
  0x7d   : > { %2827 = vmatpush3.bf16.msra.mxu0 %v3021_v56  ;;  %2866 = vmatprep.subr.bf16.mxu1 %v3020_v52 }
  0x7e   : > { %2828 = vmatprep.subr.bf16.mxu0 %v3023_v4  ;;  %2028 = vmatprep.mubr.bf16.mxu0 %v2388_v34 }
  0x7f   : > { %2086 = vmatmul.mubr.bf16.gmra.mrb[40].mxu1 %v2385_v42  ;;  %v3033_v42 = vld [vmem:[%s3857_s1 + $0x338] sm:$0xff]  }
  0x80   : > { %2867 = vmatpush3.bf16.msra.mxu1 %v3022_v55  ;;  %2093 = vmatprep.mubr.bf16.mxu1 %v2390_v8 }
  0x81   : > { %2829 = vmatpush3.bf16.msra.mxu0 %v3025_v35  ;;  %2868 = vmatprep.subr.bf16.mxu1 %v3024_v31 }
  0x82   : > { %2830 = vmatprep.subr.bf16.mxu0 %v3027_v29 }
  0x84   : > { %2029 = vmatmul.mubr.bf16.gmra.mrb[44].mxu0 %v2387_v58  ;;  %2869 = vmatpush3.bf16.msra.mxu1 %v3026_v36 }
  0x85   : > { %2831 = vmatpush3.bf16.msra.mxu0 %v3029_v61  ;;  %2870 = vmatprep.subr.bf16.mxu1 %v3028_v44 }
  0x86   : > { %2832 = vmatprep.subr.bf16.mxu0 %v3031_v53  ;;  %2134 = vmatprep.mubr.bf16.mxu0 %v2392_v39 }
  0x87   : > { %2094 = vmatmul.mubr.bf16.gmra.mrb[44].mxu1 %v2389_v11 }
  0x88   : > { %2871 = vmatpush3.bf16.msra.mxu1 %v3030_v13  ;;  %2199 = vmatprep.mubr.bf16.mxu1 %v2394_v18 }
  0x89   : > { %2833 = vmatpush3.bf16.msra.mxu0 %v3033_v42  ;;  %2872 = vmatprep.subr.bf16.mxu1 %v3032_v60 }
  0x8c   : > { %2135 = vmatmul.mubr.bf16.vlgmr.msra.gmra.mrb[48].mxu0 %v2391_v54  ;;  %2873 = vmatpush3.bf16.msra.mxu1 %v3034_v22  ;;  %v447_v54 = vrot.slane %v445_v12, 5 }
  0x8d   : > { %2142 = vmatprep.mubr.bf16.mxu0 %v2396_v7 }
  0x8e   : > { %v448_v14 = vsel %vm3412_vm2, %v443_v45, %v447_v54 }
  0x8f   : > { %2200 = vmatmul.mubr.bf16.vlgmr.msra.gmra.mrb[48].mxu1 %v2393_v5  ;;  %v461_v5 = vrot.slane %v459_v50, 5  ;;  %v2404_v48 = vcombine.high %v3614_v59, %v448_v14  ;;  %v2403_v49 = vcombine.low %v3614_v59, %v448_v14 }
  0x90   : > { %2207 = vmatprep.mubr.bf16.mxu1 %v2398_v57 }
  0x91   : > { %v462_v0 = vsel %vm3412_vm2, %v457_v47, %v461_v5 }
  0x92   : > { %v2406_v51 = vcombine.high %v3638_v24, %v462_v0  ;;  %v2405_v2 = vcombine.low %v3638_v24, %v462_v0 }
  0x94   : > { %2143 = vmatmul.mubr.bf16.gmra.mrb[52].mxu0 %v2395_v62 }
  0x95   : > { %2150 = vmatprep.mubr.bf16.mxu0 %v2400_v41 }
  0x97   : > { %2208 = vmatmul.mubr.bf16.gmra.mrb[52].mxu1 %v2397_v19 }
  0x98   : > { %2215 = vmatprep.mubr.bf16.mxu1 %v2402_v38 }
  0x9c   : > { %2151 = vmatmul.mubr.bf16.gmra.mrb[56].mxu0 %v2399_v1 }
  0x9d   : > { %2158 = vmatprep.mubr.bf16.mxu0 %v2404_v48 }
  0x9f   : > { %2216 = vmatmul.mubr.bf16.gmra.mrb[56].mxu1 %v2401_v17 }
  0xa0   : > { %2223 = vmatprep.mubr.bf16.mxu1 %v2406_v51 }
  0xa4   : > { %2159 = vmatmul.mubr.bf16.gmra.mrb[60].mxu0 %v2403_v49 }
  0xa7   : > { %2224 = vmatmul.mubr.bf16.gmra.mrb[60].mxu1 %v2405_v2 }
  0xfa   : > { %v2594_v32 = vpop.f32.mrb[0].mxu0 }
  0xfb   : > { %v2634_v19 = vpop.f32.mrb[0].mxu1  ;;  %v2595_v40 = vpop.f32.mrb[1].mxu0 }
  0xfc   : > { %v2596_v63 = vadd.f32 %v2595_v40, %v2594_v32  ;;  %v2635_v9 = vpop.f32.mrb[1].mxu1  ;;  %v2597_v21 = vpop.f32.mrb[2].mxu0 }
  0xfd   : > { %v2636_v30 = vadd.f32 %v2635_v9, %v2634_v19  ;;  %v2637_v52 = vpop.f32.mrb[2].mxu1  ;;  %v2598_v56 = vpop.f32.mrb[3].mxu0 }
  0xfe   : > { %v1747_v4 = vadd.f32 %v2596_v63, %v2407_v20  ;;  %v2599_v59 = vadd.f32 %v2598_v56, %v2597_v21  ;;  %v2638_v37 = vpop.f32.mrb[3].mxu1 }
  0xff   : > { %v2639_v55 = vadd.f32 %v2638_v37, %v2637_v52 }
 0x100   : > { %v1812_v34 = vadd.f32 %v2636_v30, %v1747_v4  ;;  %v1750_v24 = vadd.f32 %v2599_v59, %v2407_v20 }
 0x102   : > { %v3822_v3 = vadd.f32 %v2639_v55, %v1750_v24  ;;  %v2600_v35 = vpop.f32.mrb[4].mxu0 }
 0x103   : > { %v2640_v31 = vpop.f32.mrb[4].mxu1  ;;  %v2601_v8 = vpop.f32.mrb[5].mxu0 }
 0x104   : > { %v2602_v36 = vadd.f32 %v2601_v8, %v2600_v35  ;;  %v2641_v29 = vpop.f32.mrb[5].mxu1  ;;  %v2603_v58 = vpop.f32.mrb[6].mxu0 }
 0x105   : > { %v2642_v44 = vadd.f32 %v2641_v29, %v2640_v31  ;;  %v2643_v61 = vpop.f32.mrb[6].mxu1  ;;  %v2604_v53 = vpop.f32.mrb[7].mxu0 }
 0x106   : > { %v1755_v39 = vadd.f32 %v2602_v36, %v2407_v20  ;;  %v2605_v11 = vadd.f32 %v2604_v53, %v2603_v58  ;;  %v2644_v13 = vpop.f32.mrb[7].mxu1 }
 0x107   : > { %v2645_v42 = vadd.f32 %v2644_v13, %v2643_v61 }
 0x108   : > { %v1820_v6 = vadd.f32 %v2642_v44, %v1755_v39  ;;  %v1758_v10 = vadd.f32 %v2605_v11, %v2407_v20 }
 0x10a   : > { %v3824_v60 = vadd.f32 %v2645_v42, %v1758_v10  ;;  %v2606_v18 = vpop.f32.mrb[8].mxu0 }
 0x10b   : > { %v2646_v22 = vpop.f32.mrb[8].mxu1  ;;  %v2607_v7 = vpop.f32.mrb[9].mxu0 }
 0x10c   : > { %v2608_v23 = vadd.f32 %v2607_v7, %v2606_v18  ;;  %v2647_v25 = vpop.f32.mrb[9].mxu1  ;;  %v2609_v26 = vpop.f32.mrb[10].mxu0 }
 0x10d   : > { %v2648_v27 = vadd.f32 %v2647_v25, %v2646_v22  ;;  %v2649_v28 = vpop.f32.mrb[10].mxu1  ;;  %v2610_v57 = vpop.f32.mrb[11].mxu0 }
 0x10e   : > { %v1763_v43 = vadd.f32 %v2608_v23, %v2407_v20  ;;  %v2611_v12 = vadd.f32 %v2610_v57, %v2609_v26  ;;  %v2650_v15 = vpop.f32.mrb[11].mxu1 }
 0x10f   : > { %v2651_v46 = vadd.f32 %v2650_v15, %v2649_v28 }
 0x110   : > { %v1828_v33 = vadd.f32 %v2648_v27, %v1763_v43  ;;  %v1766_v62 = vadd.f32 %v2611_v12, %v2407_v20 }
 0x112   : > { %v1831_v41 = vadd.f32 %v2651_v46, %v1766_v62  ;;  %v2612_v45 = vpop.f32.mrb[12].mxu0 }
 0x113   : > { %v2652_v54 = vpop.f32.mrb[12].mxu1  ;;  %v2613_v16 = vpop.f32.mrb[13].mxu0 }
 0x114   : > { %v2653_v50 = vpop.f32.mrb[13].mxu1  ;;  %v2614_v38 = vadd.f32 %v2613_v16, %v2612_v45  ;;  %v2615_v47 = vpop.f32.mrb[14].mxu0 }
 0x115   : > { %v2654_v14 = vadd.f32 %v2653_v50, %v2652_v54  ;;  %v2655_v5 = vpop.f32.mrb[14].mxu1  ;;  %v2616_v1 = vpop.f32.mrb[15].mxu0 }
 0x116   : > { %v2656_v48 = vpop.f32.mrb[15].mxu1  ;;  %v1771_v0 = vadd.f32 %v2614_v38, %v2407_v20  ;;  %v2617_v17 = vadd.f32 %v2616_v1, %v2615_v47 }
 0x117   : > { %v2657_v51 = vadd.f32 %v2656_v48, %v2655_v5 }
 0x118   : > { %v1836_v49 = vadd.f32 %v2654_v14, %v1771_v0  ;;  %v1774_v2 = vadd.f32 %v2617_v17, %v2407_v20 }
 0x11a   : > { %v1839_v32 = vadd.f32 %v2657_v51, %v1774_v2  ;;  %v2674_v19 = vpop.f32.mrb[16].mxu0 }
 0x11b   : > { %v2714_v40 = vpop.f32.mrb[16].mxu1  ;;  %v2675_v63 = vpop.f32.mrb[17].mxu0 }
 0x11c   : > { %v2676_v9 = vadd.f32 %v2675_v63, %v2674_v19  ;;  %v2715_v21 = vpop.f32.mrb[17].mxu1  ;;  %v2677_v30 = vpop.f32.mrb[18].mxu0 }
 0x11d   : > { %v2716_v52 = vadd.f32 %v2715_v21, %v2714_v40  ;;  %v2717_v56 = vpop.f32.mrb[18].mxu1  ;;  %v2678_v4 = vpop.f32.mrb[19].mxu0 }
 0x11e   : > { %v1877_v59 = vadd.f32 %v2676_v9, %v1812_v34  ;;  %v2679_v37 = vadd.f32 %v2678_v4, %v2677_v30  ;;  %v2718_v55 = vpop.f32.mrb[19].mxu1 }
 0x11f   : > { %v2719_v24 = vadd.f32 %v2718_v55, %v2717_v56 }
 0x120   : > { %v1942_v35 = vadd.f32 %v2716_v52, %v1877_v59  ;;  %v1880_v31 = vadd.f32 %v2679_v37, %v3822_v3 }
 0x122   : > { %v1945_v8 = vadd.f32 %v2719_v24, %v1880_v31  ;;  %v2680_v36 = vpop.f32.mrb[20].mxu0 }
 0x123   : > { %v2720_v20 = vpop.f32.mrb[20].mxu1  ;;  %v2681_v29 = vpop.f32.mrb[21].mxu0 }
 0x124   : > { %v2682_v58 = vadd.f32 %v2681_v29, %v2680_v36  ;;  %v2721_v44 = vpop.f32.mrb[21].mxu1  ;;  %v2683_v61 = vpop.f32.mrb[22].mxu0 }
 0x125   : > { %v2722_v53 = vadd.f32 %v2721_v44, %v2720_v20  ;;  %v2723_v39 = vpop.f32.mrb[22].mxu1  ;;  %v2684_v11 = vpop.f32.mrb[23].mxu0 }
 0x126   : > { %v1885_v13 = vadd.f32 %v2682_v58, %v1820_v6  ;;  %v2685_v42 = vadd.f32 %v2684_v11, %v2683_v61  ;;  %v2724_v10 = vpop.f32.mrb[23].mxu1 }
 0x127   : > { %v2725_v34 = vadd.f32 %v2724_v10, %v2723_v39 }
 0x128   : > { %v1950_v18 = vadd.f32 %v2722_v53, %v1885_v13  ;;  %v1888_v22 = vadd.f32 %v2685_v42, %v3824_v60 }
 0x12a   : > { %v1953_v7 = vadd.f32 %v2725_v34, %v1888_v22  ;;  %v2686_v23 = vpop.f32.mrb[24].mxu0 }
 0x12b   : > { %v2687_v3 = vpop.f32.mrb[25].mxu0 }
 0x12c   : > { %v2688_v26 = vadd.f32 %v2687_v3, %v2686_v23  ;;  %v2689_v27 = vpop.f32.mrb[26].mxu0 }
 0x12d   : > { %v2726_v25 = vpop.f32.mrb[24].mxu1  ;;  %v2690_v57 = vpop.f32.mrb[27].mxu0 }
 0x12e   : > { %v2727_v28 = vpop.f32.mrb[25].mxu1  ;;  %v1893_v43 = vadd.f32 %v2688_v26, %v1828_v33  ;;  %v2691_v46 = vadd.f32 %v2690_v57, %v2689_v27 }
 0x12f   : > { %v2728_v12 = vadd.f32 %v2727_v28, %v2726_v25  ;;  %v2729_v15 = vpop.f32.mrb[26].mxu1 }
 0x130   : > { %v2730_v62 = vpop.f32.mrb[27].mxu1  ;;  %v1896_v45 = vadd.f32 %v2691_v46, %v1831_v41 }
 0x131   : > { %v1958_v6 = vadd.f32 %v2728_v12, %v1893_v43  ;;  %v2731_v54 = vadd.f32 %v2730_v62, %v2729_v15 }
 0x133   : > { %v1961_v16 = vadd.f32 %v2731_v54, %v1896_v45 }
 0x137   : > { %v2692_v50 = vpop.f32.mrb[28].mxu0 }
 0x138   : > { %v2693_v38 = vpop.f32.mrb[29].mxu0 }
 0x139   : > { %v2694_v60 = vadd.f32 %v2693_v38, %v2692_v50  ;;  %v2695_v14 = vpop.f32.mrb[30].mxu0 }
 0x13a   : > { %v2696_v47 = vpop.f32.mrb[31].mxu0  ;;  %v2732_v5 = vpop.f32.mrb[28].mxu1 }
 0x13b   : > { %v1901_v1 = vadd.f32 %v2694_v60, %v1836_v49  ;;  %v2697_v48 = vadd.f32 %v2696_v47, %v2695_v14  ;;  %v2733_v0 = vpop.f32.mrb[29].mxu1 }
 0x13c   : > { %v2734_v17 = vadd.f32 %v2733_v0, %v2732_v5  ;;  %v2735_v51 = vpop.f32.mrb[30].mxu1 }
 0x13d   : > { %v1904_v33 = vadd.f32 %v2697_v48, %v1839_v32  ;;  %v2736_v2 = vpop.f32.mrb[31].mxu1 }
 0x13e   : > { %v1966_v19 = vadd.f32 %v2734_v17, %v1901_v1  ;;  %v2737_v40 = vadd.f32 %v2736_v2, %v2735_v51 }
 0x13f   : > { %v2754_v63 = vpop.f32.mrb[32].mxu0 }
 0x140   : > { %v2755_v9 = vpop.f32.mrb[33].mxu0  ;;  %v1969_v41 = vadd.f32 %v2737_v40, %v1904_v33 }
 0x141   : > { %v2756_v21 = vadd.f32 %v2755_v9, %v2754_v63  ;;  %v2757_v30 = vpop.f32.mrb[34].mxu0 }
 0x142   : > { %v2758_v52 = vpop.f32.mrb[35].mxu0  ;;  %v2794_v56 = vpop.f32.mrb[32].mxu1 }
 0x143   : > { %v2007_v4 = vadd.f32 %v2756_v21, %v1942_v35  ;;  %v2759_v59 = vadd.f32 %v2758_v52, %v2757_v30  ;;  %v2795_v37 = vpop.f32.mrb[33].mxu1 }
 0x144   : > { %v2796_v55 = vadd.f32 %v2795_v37, %v2794_v56  ;;  %v2797_v49 = vpop.f32.mrb[34].mxu1 }
 0x145   : > { %v2010_v24 = vadd.f32 %v2759_v59, %v1945_v8  ;;  %v2798_v31 = vpop.f32.mrb[35].mxu1 }
 0x146   : > { %v2072_v36 = vadd.f32 %v2796_v55, %v2007_v4  ;;  %v2799_v20 = vadd.f32 %v2798_v31, %v2797_v49 }
 0x147   : > { %v2760_v32 = vpop.f32.mrb[36].mxu0 }
 0x148   : > { %v2761_v29 = vpop.f32.mrb[37].mxu0  ;;  %v2075_v58 = vadd.f32 %v2799_v20, %v2010_v24 }
 0x149   : > { %v2762_v44 = vadd.f32 %v2761_v29, %v2760_v32  ;;  %v2763_v61 = vpop.f32.mrb[38].mxu0 }
 0x14a   : > { %v2764_v53 = vpop.f32.mrb[39].mxu0  ;;  %v2800_v39 = vpop.f32.mrb[36].mxu1 }
 0x14b   : > { %v2015_v11 = vadd.f32 %v2762_v44, %v1950_v18  ;;  %v2765_v13 = vadd.f32 %v2764_v53, %v2763_v61  ;;  %v2801_v42 = vpop.f32.mrb[37].mxu1 }
 0x14c   : > { %v2802_v10 = vadd.f32 %v2801_v42, %v2800_v39  ;;  %v2803_v35 = vpop.f32.mrb[38].mxu1 }
 0x14d   : > { %v2018_v34 = vadd.f32 %v2765_v13, %v1953_v7  ;;  %v2804_v22 = vpop.f32.mrb[39].mxu1 }
 0x14e   : > { %v2080_v23 = vadd.f32 %v2802_v10, %v2015_v11  ;;  %v2805_v3 = vadd.f32 %v2804_v22, %v2803_v35 }
 0x14f   : > { %v2766_v8 = vpop.f32.mrb[40].mxu0 }
 0x150   : > { %v2767_v25 = vpop.f32.mrb[41].mxu0  ;;  %v3828_v26 = vadd.f32 %v2805_v3, %v2018_v34 }
 0x151   : > { %v2768_v27 = vadd.f32 %v2767_v25, %v2766_v8  ;;  %v2769_v28 = vpop.f32.mrb[42].mxu0 }
 0x152   : > { %v2770_v57 = vpop.f32.mrb[43].mxu0  ;;  %v2806_v43 = vpop.f32.mrb[40].mxu1 }
 0x153   : > { %v2023_v12 = vadd.f32 %v2768_v27, %v1958_v6  ;;  %v2771_v15 = vadd.f32 %v2770_v57, %v2769_v28  ;;  %v2807_v46 = vpop.f32.mrb[41].mxu1 }
 0x154   : > { %v2808_v18 = vadd.f32 %v2807_v46, %v2806_v43  ;;  %v2809_v62 = vpop.f32.mrb[42].mxu1 }
 0x155   : > { %v2026_v45 = vadd.f32 %v2771_v15, %v1961_v16  ;;  %v2810_v54 = vpop.f32.mrb[43].mxu1 }
 0x156   : > { %v3830_v50 = vadd.f32 %v2808_v18, %v2023_v12  ;;  %v2811_v7 = vadd.f32 %v2810_v54, %v2809_v62 }
 0x157   : > { %v2772_v38 = vpop.f32.mrb[44].mxu0 }
 0x158   : > { %v2773_v60 = vpop.f32.mrb[45].mxu0  ;;  %v3832_v14 = vadd.f32 %v2811_v7, %v2026_v45 }
 0x159   : > { %v2774_v47 = vadd.f32 %v2773_v60, %v2772_v38  ;;  %v2775_v5 = vpop.f32.mrb[46].mxu0 }
 0x15a   : > { %v2776_v1 = vpop.f32.mrb[47].mxu0  ;;  %v2812_v48 = vpop.f32.mrb[44].mxu1 }
 0x15b   : > { %v2031_v0 = vadd.f32 %v2774_v47, %v1966_v19  ;;  %v2777_v17 = vadd.f32 %v2776_v1, %v2775_v5  ;;  %v2813_v6 = vpop.f32.mrb[45].mxu1 }
 0x15c   : > { %v2814_v51 = vadd.f32 %v2813_v6, %v2812_v48  ;;  %v2815_v33 = vpop.f32.mrb[46].mxu1 }
 0x15d   : > { %v2034_v2 = vadd.f32 %v2777_v17, %v1969_v41  ;;  %v2816_v40 = vpop.f32.mrb[47].mxu1 }
 0x15e   : > { %v3834_v16 = vadd.f32 %v2814_v51, %v2031_v0  ;;  %v2817_v63 = vadd.f32 %v2816_v40, %v2815_v33 }
 0x15f   : > { %v2834_v9 = vpop.f32.mrb[48].mxu0 }
 0x160   : > { %v2835_v21 = vpop.f32.mrb[49].mxu0  ;;  %v3836_v30 = vadd.f32 %v2817_v63, %v2034_v2 }
 0x161   : > { %v2836_v52 = vadd.f32 %v2835_v21, %v2834_v9  ;;  %v2837_v56 = vpop.f32.mrb[50].mxu0 }
 0x162   : > { %v2838_v4 = vpop.f32.mrb[51].mxu0  ;;  %v2874_v59 = vpop.f32.mrb[48].mxu1 }
 0x163   : > { %v2137_v37 = vadd.f32 %v2836_v52, %v2072_v36  ;;  %v2839_v19 = vadd.f32 %v2838_v4, %v2837_v56  ;;  %v2875_v55 = vpop.f32.mrb[49].mxu1 }
 0x164   : > { %v2876_v49 = vadd.f32 %v2875_v55, %v2874_v59  ;;  %v2877_v24 = vpop.f32.mrb[50].mxu1 }
 0x165   : > { %v2140_v31 = vadd.f32 %v2839_v19, %v2075_v58  ;;  %v2878_v41 = vpop.f32.mrb[51].mxu1 }
 0x166   : > { %v2202_v20 = vadd.f32 %v2876_v49, %v2137_v37  ;;  %v2879_v32 = vadd.f32 %v2878_v41, %v2877_v24 }
 0x167   : > { %v2840_v29 = vpop.f32.mrb[52].mxu0 }
 0x168   : > { %v2841_v44 = vpop.f32.mrb[53].mxu0  ;;  %v2205_v61 = vadd.f32 %v2879_v32, %v2140_v31  ;;  %v2232_v13 = vmax.f32 %v2202_v20, 0.0 }
 0x169   : > { %v2842_v53 = vadd.f32 %v2841_v44, %v2840_v29  ;;  %v2843_v39 = vpop.f32.mrb[54].mxu0 }
 0x16a   : > { %v2844_v11 = vpop.f32.mrb[55].mxu0  ;;  %v2233_v42 = vmax.f32 %v2205_v61, 0.0  ;;  %v2880_v10 = vpop.f32.mrb[52].mxu1 }
 0x16b   : > { %v2145_v35 = vadd.f32 %v2842_v53, %v2080_v23  ;;  %v2845_v36 = vadd.f32 %v2844_v11, %v2843_v39  ;;  %v2881_v58 = vpop.f32.mrb[53].mxu1 }
 0x16c   : > { %v2558_v34 = vpack.c.bf16 %v2233_v42, %v2232_v13  ;;  %v2882_v22 = vadd.f32 %v2881_v58, %v2880_v10  ;;  %v2883_v3 = vpop.f32.mrb[54].mxu1 }
 0x16d   : > { %v2148_v8 = vadd.f32 %v2845_v36, %v3828_v26  ;;  %v2884_v25 = vpop.f32.mrb[55].mxu1 }
 0x16e   : > { %2559 = vst [vmem:[%s3842_s9] sm:$0xff] %v2558_v34   ;;  %v2210_v27 = vadd.f32 %v2882_v22, %v2145_v35  ;;  %v2885_v28 = vadd.f32 %v2884_v25, %v2883_v3 }
 0x16f   : > { %v2846_v57 = vpop.f32.mrb[56].mxu0 }
 0x170   : > { %v2847_v43 = vpop.f32.mrb[57].mxu0  ;;  %v2213_v23 = vadd.f32 %v2885_v28, %v2148_v8  ;;  %v2234_v18 = vmax.f32 %v2210_v27, 0.0 }
 0x171   : > { %v2848_v12 = vadd.f32 %v2847_v43, %v2846_v57  ;;  %v2849_v15 = vpop.f32.mrb[58].mxu0 }
 0x172   : > { %v2850_v46 = vpop.f32.mrb[59].mxu0  ;;  %v2235_v62 = vmax.f32 %v2213_v23, 0.0  ;;  %v2886_v45 = vpop.f32.mrb[56].mxu1 }
 0x173   : > { %v2153_v54 = vadd.f32 %v2848_v12, %v3830_v50  ;;  %v2851_v7 = vadd.f32 %v2850_v46, %v2849_v15  ;;  %v2887_v38 = vpop.f32.mrb[57].mxu1 }
 0x174   : > { %v2563_v60 = vpack.c.bf16 %v2235_v62, %v2234_v18  ;;  %v2888_v26 = vadd.f32 %v2887_v38, %v2886_v45  ;;  %v2889_v47 = vpop.f32.mrb[58].mxu1 }
 0x175   : > { %v2156_v5 = vadd.f32 %v2851_v7, %v3832_v14  ;;  %v2890_v1 = vpop.f32.mrb[59].mxu1 }
 0x176   : > { %2575 = vst [vmem:[%s3842_s9 + $0x8] sm:$0xff] %v2563_v60   ;;  %v2218_v48 = vadd.f32 %v2888_v26, %v2153_v54  ;;  %v2891_v0 = vadd.f32 %v2890_v1, %v2889_v47 }
 0x177   : > { %v2852_v17 = vpop.f32.mrb[60].mxu0 }
 0x178   : > { %v2853_v6 = vpop.f32.mrb[61].mxu0  ;;  %v2221_v51 = vadd.f32 %v2891_v0, %v2156_v5  ;;  %v2236_v63 = vmax.f32 %v2218_v48, 0.0 }
 0x179   : > { %v2854_v33 = vadd.f32 %v2853_v6, %v2852_v17  ;;  %v2855_v2 = vpop.f32.mrb[62].mxu0 }
 0x17a   : > { %v2856_v40 = vpop.f32.mrb[63].mxu0  ;;  %v2237_v50 = vmax.f32 %v2221_v51, 0.0  ;;  %v2892_v9 = vpop.f32.mrb[60].mxu1 }
 0x17b   : > { %v2161_v21 = vadd.f32 %v2854_v33, %v3834_v16  ;;  %v2857_v52 = vadd.f32 %v2856_v40, %v2855_v2  ;;  %v2893_v56 = vpop.f32.mrb[61].mxu1 }
 0x17c   : > { %v2568_v14 = vpack.c.bf16 %v2237_v50, %v2236_v63  ;;  %v2894_v4 = vadd.f32 %v2893_v56, %v2892_v9  ;;  %v2895_v59 = vpop.f32.mrb[62].mxu1 }
 0x17d   : > { %v2164_v37 = vadd.f32 %v2857_v52, %v3836_v30  ;;  %v2896_v19 = vpop.f32.mrb[63].mxu1 }
 0x17e   : > { %2576 = vst [vmem:[%s3842_s9 + $0x10] sm:$0xff] %v2568_v14   ;;  %v2226_v55 = vadd.f32 %v2894_v4, %v2161_v21  ;;  %v2897_v49 = vadd.f32 %v2896_v19, %v2895_v59 }
 0x180   : > { %v2229_v24 = vadd.f32 %v2897_v49, %v2164_v37  ;;  %v2238_v31 = vmax.f32 %v2226_v55, 0.0 }
 0x182   : > { %v2239_v41 = vmax.f32 %v2229_v24, 0.0 }
 0x184   : > { %v2573_v20 = vpack.c.bf16 %v2239_v41, %v2238_v31 }
 0x186   : > { %2577 = vst [vmem:[%s3842_s9 + $0x18] sm:$0xff] %v2573_v20  }
 0x187 PF: > { %s13_s12 = sadd.s32 1, %s3041_s12  }
 0x188   : > { %p10_p4 = scmp.ge.s32.totalorder %s13_s12, 4  }
 0x18a   :  { %12 = sbr.rel (!%p10_p4) target bundleno = 1 (0x1), region = 62 }

// kernel: bottleneck_block.5
= control target key start
LH: loop header
LB: loop body
LE: loop exit
PB: predicated region body
PF: predicated region fallthrough
CT: control target
= control target key end

     0   :  { %s1107_s21 = smov 0   ;;  %s1109_s22 = smov 0   ;;  %s1223_s0 = inlined_call_operand.vmem [shape: bf16[128,128], index: 0, kind: input, shape index: {}]   ;;  %s1224_s1 = inlined_call_operand.vmem [shape: bf16[128,128], index: 1, kind: input, shape index: {}]   ;;  %s1225_s2 = inlined_call_operand.vmem [shape: f32[1,128], index: 2, kind: input, shape index: {}]   ;;  %s1226_s3 = inlined_call_operand.vmem [shape: bf16[128,128], index: 3, kind: input, shape index: {}]   ;;  %s1227_s4 = inlined_call_operand.vmem [shape: bf16[128,128], index: 4, kind: input, shape index: {}]   ;;  %s1228_s5 = inlined_call_operand.vmem [shape: f32[1,128], index: 5, kind: input, shape index: {}]   ;;  %s1229_s6 = inlined_call_operand.vmem [shape: f32[128,128], index: 6, kind: output, shape index: {}]  }
   0x1   :  { %s1111_s23 = smov 0  }
   0x2 LB: > { %s28_s24 = sadd.s32 1, %s1066_s22  ;;  %p869_p0 = scmp.ge.s32.totalorder %s1070_s23, 1  ;;  %s1070_s23 = sphi %s1111_s23, %s16_s23   ;;  %s1066_s22 = sphi %s1109_s22, %s1231_s22   ;;  %s1062_s21 = sphi %s1107_s21, %s1230_s21  }
   0x3   : > { %p30_p1 = scmp.ge.s32.totalorder %s28_s24, 2  ;;  %p272_p2 = scmp.lt.s32.totalorder %s1070_s23, 3 }
   0x5   : > { %s1233_s24 = smov (%p30_p1, %s28_s24), 0  ;;  %p273_p3 = pnand %p869_p0, %p272_p2 }
   0x6   : > { %v1024_v0 = vld [vmem:[%s1224_s1] sm:$0xff] (!%p273_p3)   ;;  %s870_s27 = sshll.u32 (!%p273_p3), %s1062_s21, 3  ;;  %v1026_v2 = vld [vmem:[%s1224_s1 + $0x8] sm:$0xff] (!%p273_p3)   ;;  %v1028_v4 = vld [vmem:[%s1224_s1 + $0x10] sm:$0xff] (!%p273_p3)  }
   0x7   : > { %276 = sbr.rel (%p273_p3) target bundleno = 271 (0x10f), region = 44  ;;  %v1025_v1 = vld [vmem:[%s1227_s4] sm:$0xff] (!%p273_p3)   ;;  %928 = vmatprep.subr.bf16.mxu1 (!%p273_p3), %v1024_v0  ;;  %p325_p4 = scmp.lt.s32.totalorder (!%p273_p3), %s870_s27, 15  ;;  %v1027_v3 = vld [vmem:[%s1227_s4 + $0x8] sm:$0xff] (!%p273_p3)   ;;  %v1029_v5 = vld [vmem:[%s1227_s4 + $0x10] sm:$0xff] (!%p273_p3)  }
   0x8   : > { %929 = vmatpush3.bf16.msra.mxu1 (!%p273_p3), %v1024_v0  ;;  %952 = vmatprep.subr.bf16.mxu0 (!%p273_p3), %v1025_v1  ;;  %v1030_v6 = vld [vmem:[%s1224_s1 + $0x18] sm:$0xff] (!%p273_p3)   ;;  %v1032_v8 = vld [vmem:[%s1224_s1 + $0x20] sm:$0xff] (!%p273_p3)   ;;  %v1034_v10 = vld [vmem:[%s1224_s1 + $0x28] sm:$0xff] (!%p273_p3)  }
   0x9   : > { %953 = vmatpush3.bf16.msra.mxu0 (!%p273_p3), %v1025_v1  ;;  %930 = vmatprep.subr.bf16.mxu1 (!%p273_p3), %v1026_v2  ;;  %v1031_v7 = vld [vmem:[%s1227_s4 + $0x18] sm:$0xff] (!%p273_p3)   ;;  %v1033_v9 = vld [vmem:[%s1227_s4 + $0x20] sm:$0xff] (!%p273_p3)   ;;  %v1035_v12 = vld [vmem:[%s1227_s4 + $0x28] sm:$0xff] (!%p273_p3)  }
   0xa   : > { %954 = vmatprep.subr.bf16.mxu0 (!%p273_p3), %v1027_v3  ;;  %v1036_v14 = vld [vmem:[%s1224_s1 + $0x30] sm:$0xff] (!%p273_p3)   ;;  %v1038_v16 = vld [vmem:[%s1224_s1 + $0x38] sm:$0xff] (!%p273_p3)   ;;  %v876_v24 = vld [vmem:[%s1225_s2] ss:$0 sm:$0xff] (!%p273_p3) }
   0xb   : > { %v1037_v15 = vld [vmem:[%s1227_s4 + $0x30] sm:$0xff] (!%p273_p3)   ;;  %v1039_v17 = vld [vmem:[%s1227_s4 + $0x38] sm:$0xff] (!%p273_p3)   ;;  %v889_v30 = vld [vmem:[%s1228_s5] ss:$0 sm:$0xff] (!%p273_p3) }
   0xc   : > { %931 = vmatpush3.bf16.msra.mxu1 (!%p273_p3), %v1026_v2 }
   0xd   : > { %955 = vmatpush3.bf16.msra.mxu0 (!%p273_p3), %v1027_v3  ;;  %932 = vmatprep.subr.bf16.mxu1 (!%p273_p3), %v1028_v4 }
   0xe   : > { %s1235_s27 = smov (!%p325_p4, %s870_s27), 15  ;;  %956 = vmatprep.subr.bf16.mxu0 %v1029_v5 }
   0xf   : > { %s871_s18 = sshll.u32 %s1235_s27, 2  ;;  %s875_s30 = sshll.u32 %s1235_s27, 3 }
  0x10   : > { %933 = vmatpush3.bf16.msra.mxu1 %v1028_v4  ;;  %s1161_s29 = scalar_lea.vmem %s1223_s0, %s871_s18  ;;  %s1169_s10 = scalar_lea.vmem %s1226_s3, %s871_s18 }
  0x11   : > { %957 = vmatpush3.bf16.msra.mxu0 %v1029_v5  ;;  %934 = vmatprep.subr.bf16.mxu1 %v1030_v6  ;;  %v1040_v11 = vld [vmem:[%s1161_s29] sm:$0xff]   ;;  %v1041_v18 = vld [vmem:[%s1161_s29 + $0x8] sm:$0xff]   ;;  %v1044_v20 = vld [vmem:[%s1161_s29 + $0x10] sm:$0xff]   ;;  %s1204_s8 = scalar_lea.vmem %s1229_s6, %s875_s30 }
  0x12   : > { %958 = vmatprep.subr.bf16.mxu0 %v1031_v7  ;;  %944 = vmatprep.mubr.bf16.mxu1 %v1040_v11  ;;  %v1042_v13 = vld [vmem:[%s1169_s10] sm:$0xff]   ;;  %v1043_v19 = vld [vmem:[%s1169_s10 + $0x8] sm:$0xff]   ;;  %v1046_v21 = vld [vmem:[%s1169_s10 + $0x10] sm:$0xff]  }
  0x13   : > { %968 = vmatprep.mubr.bf16.mxu0 %v1042_v13  ;;  %v1045_v22 = vld [vmem:[%s1161_s29 + $0x18] sm:$0xff]  }
  0x14   : > { %935 = vmatpush3.bf16.msra.mxu1 %v1030_v6  ;;  %v1047_v23 = vld [vmem:[%s1169_s10 + $0x18] sm:$0xff]  }
  0x15   : > { %959 = vmatpush3.bf16.msra.mxu0 %v1031_v7  ;;  %936 = vmatprep.subr.bf16.mxu1 %v1032_v8 }
  0x16   : > { %960 = vmatprep.subr.bf16.mxu0 %v1033_v9 }
  0x18   : > { %937 = vmatpush3.bf16.msra.mxu1 %v1032_v8 }
  0x19   : > { %961 = vmatpush3.bf16.msra.mxu0 %v1033_v9  ;;  %938 = vmatprep.subr.bf16.mxu1 %v1034_v10 }
  0x1a   : > { %962 = vmatprep.subr.bf16.mxu0 %v1035_v12 }
  0x1c   : > { %939 = vmatpush3.bf16.msra.mxu1 %v1034_v10 }
  0x1d   : > { %963 = vmatpush3.bf16.msra.mxu0 %v1035_v12  ;;  %940 = vmatprep.subr.bf16.mxu1 %v1036_v14 }
  0x1e   : > { %964 = vmatprep.subr.bf16.mxu0 %v1037_v15 }
  0x20   : > { %941 = vmatpush3.bf16.msra.mxu1 %v1036_v14 }
  0x21   : > { %965 = vmatpush3.bf16.msra.mxu0 %v1037_v15  ;;  %942 = vmatprep.subr.bf16.mxu1 %v1038_v16 }
  0x22   : > { %966 = vmatprep.subr.bf16.mxu0 %v1039_v17 }
  0x24   : > { %943 = vmatpush3.bf16.msra.mxu1 %v1038_v16 }
  0x25   : > { %967 = vmatpush3.bf16.msra.mxu0 %v1039_v17 }
  0x27   : > { %945 = vmatmul.mubr.bf16.vlgmr.msra.gmra.mrb[0].mxu1 %v1041_v18 }
  0x28   : > { %969 = vmatmul.mubr.bf16.vlgmr.msra.gmra.mrb[0].mxu0 %v1043_v19  ;;  %948 = vmatprep.mubr.bf16.mxu1 %v1044_v20 }
  0x29   : > { %972 = vmatprep.mubr.bf16.mxu0 %v1046_v21 }
  0x2f   : > { %949 = vmatmul.mubr.bf16.gmra.mrb[4].mxu1 %v1045_v22 }
  0x30   : > { %973 = vmatmul.mubr.bf16.gmra.mrb[4].mxu0 %v1047_v23 }
  0xfa   : > { %v946_v25 = vpop.f32.mrb[0].mxu1 }
  0xfb   : > { %v506_v26 = vadd.f32 %v946_v25, %v876_v24  ;;  %v497_v27 = vpop.f32.mrb[1].mxu1  ;;  %v970_v28 = vpop.f32.mrb[0].mxu0 }
  0xfc   : > { %v498_v29 = vadd.f32 %v876_v24, %v497_v27  ;;  %v947_v31 = vpop.f32.mrb[2].mxu1  ;;  %v665_v32 = vpop.f32.mrb[1].mxu0 }
  0xfd   : > { %v977_v33 = vadd.f32 %v970_v28, %v506_v26  ;;  %v509_v34 = vadd.f32 %v947_v31, %v876_v24  ;;  %v500_v35 = vpop.f32.mrb[3].mxu1  ;;  %v971_v36 = vpop.f32.mrb[2].mxu0 }
  0xfe   : > { %v980_v37 = vadd.f32 %v665_v32, %v498_v29  ;;  %v501_v38 = vadd.f32 %v876_v24, %v500_v35  ;;  %v668_v39 = vpop.f32.mrb[3].mxu0 }
  0xff   : > { %v978_v40 = vadd.f32 %v977_v33, %v889_v30  ;;  %v983_v41 = vadd.f32 %v889_v30, %v509_v34 }
 0x100   : > { %v981_v42 = vadd.f32 %v980_v37, %v889_v30  ;;  %v986_v43 = vadd.f32 %v889_v30, %v501_v38 }
 0x101   : > { %v706_v44 = vmax.f32 %v978_v40, 0.0  ;;  %v984_v45 = vadd.f32 %v983_v41, %v971_v36 }
 0x102   : > { %v704_v46 = vmax.f32 %v981_v42, 0.0  ;;  %v987_v47 = vadd.f32 %v986_v43, %v668_v39  ;;  %v950_v48 = vpop.f32.mrb[4].mxu1 }
 0x103   : > { %714 = vst [vmem:[%s1204_s8 + $0x10] sm:$0xff] %v706_v44  ;;  %v707_v49 = vmax.f32 %v984_v45, 0.0  ;;  %v522_v50 = vadd.f32 %v950_v48, %v876_v24  ;;  %v513_v51 = vpop.f32.mrb[5].mxu1  ;;  %v974_v52 = vpop.f32.mrb[4].mxu0 }
 0x104   : > { %712 = vst [vmem:[%s1204_s8] sm:$0xff] %v704_v46  ;;  %v705_v53 = vmax.f32 %v987_v47, 0.0  ;;  %v514_v54 = vadd.f32 %v876_v24, %v513_v51  ;;  %v951_v55 = vpop.f32.mrb[6].mxu1  ;;  %v681_v56 = vpop.f32.mrb[5].mxu0 }
 0x105   : > { %715 = vst [vmem:[%s1204_s8 + $0x18] sm:$0xff] %v707_v49  ;;  %v989_v57 = vadd.f32 %v889_v30, %v522_v50  ;;  %v525_v58 = vadd.f32 %v951_v55, %v876_v24  ;;  %v516_v59 = vpop.f32.mrb[7].mxu1  ;;  %v975_v60 = vpop.f32.mrb[6].mxu0 }
 0x106   : > { %713 = vst [vmem:[%s1204_s8 + $0x8] sm:$0xff] %v705_v53  ;;  %v992_v61 = vadd.f32 %v889_v30, %v514_v54  ;;  %v517_v62 = vadd.f32 %v876_v24, %v516_v59  ;;  %v684_v63 = vpop.f32.mrb[7].mxu0 }
 0x107   : > { %v990_v0 = vadd.f32 %v989_v57, %v974_v52  ;;  %v995_v1 = vadd.f32 %v889_v30, %v525_v58 }
 0x108   : > { %v993_v2 = vadd.f32 %v992_v61, %v681_v56  ;;  %v998_v3 = vadd.f32 %v889_v30, %v517_v62 }
 0x109   : > { %v710_v4 = vmax.f32 %v990_v0, 0.0  ;;  %v996_v5 = vadd.f32 %v995_v1, %v975_v60 }
 0x10a   : > { %v708_v6 = vmax.f32 %v993_v2, 0.0  ;;  %v999_v7 = vadd.f32 %v998_v3, %v684_v63 }
 0x10b   : > { %718 = vst [vmem:[%s1204_s8 + $0x30] sm:$0xff] %v710_v4  ;;  %v711_v8 = vmax.f32 %v996_v5, 0.0 }
 0x10c   : > { %716 = vst [vmem:[%s1204_s8 + $0x20] sm:$0xff] %v708_v6  ;;  %v709_v9 = vmax.f32 %v999_v7, 0.0 }
 0x10d   : > { %719 = vst [vmem:[%s1204_s8 + $0x38] sm:$0xff] %v711_v8 }
 0x10e   : > { %717 = vst [vmem:[%s1204_s8 + $0x28] sm:$0xff] %v709_v9 }
 0x10f PF: > { %s16_s23 = sadd.s32 1, %s1070_s23   ;;  %s1230_s21 = smov %s1066_s22 }
 0x110   : > { %p13_p5 = scmp.ge.s32.totalorder %s16_s23, 4   ;;  %s1231_s22 = smov %s1233_s24 }
 0x112   :  { %15 = sbr.rel (!%p13_p5) target bundleno = 2 (0x2), region = 89 }

</bundles_post_ra>
